<compile_context>
chip_gen: v7x
topology: tpu7x:2x2x1
jax: 0.10.0
libtpu: 0.0.40
codegen_flags: <defaults>
</compile_context>

<pallas_src>
import functools

import jax
import jax.numpy as jnp
from jax.experimental import pallas as pl
from jax.experimental.pallas import tpu as pltpu


def _spatial_transformer_kernel(flow_ref, src_ref, out_ref, *, H, W, HW_pad,
                                TILE_P, use_bf16):
    """One (batch, output-pixel tile) per grid step.

    flow_ref : [1, 2, TILE_P]   absolute sample coords (row, col) = grid + flow
    src_ref  : [1, C, HW_pad]   zero-padded source image (resident across p)
    out_ref  : [1, C, TILE_P]
    """
    f32 = jnp.float32

    y = flow_ref[0, 0:1, :]                    # [1, TILE_P] sample row coord
    x = flow_ref[0, 1:2, :]                    # [1, TILE_P] sample col coord

    y0 = jnp.floor(y)
    x0 = jnp.floor(x)
    wy1 = y - y0
    wx1 = x - x0

    # Separable per-axis weights with per-axis zeros-padding validity folded
    # in: corner weight w(yc, xc) = ay(yc) * ax(xc).  (x1 = x0+1, y1 = y0+1.)
    ax0 = jnp.where((x0 >= 0.0) & (x0 <= f32(W - 1)), 1.0 - wx1, 0.0)
    ax1 = jnp.where((x0 >= -1.0) & (x0 <= f32(W - 2)), wx1, 0.0)
    ay0 = jnp.where((y0 >= 0.0) & (y0 <= f32(H - 1)), 1.0 - wy1, 0.0)
    ay1 = jnp.where((y0 >= -1.0) & (y0 <= f32(H - 2)), wy1, 0.0)

    # One-hot of corner (y0, x0) along the Q axis.  q00 may be negative by at
    # most W+1 when a derived corner is still in bounds; shifting negatives up
    # by HW_pad makes the other three corners exact mod-HW_pad sublane rolls.
    # Wrapped / spurious rows always belong to out-of-bounds corners whose
    # weight factor above is exactly zero (see invariant in header).
    q00 = y0.astype(jnp.int32) * W + x0.astype(jnp.int32)         # [1, TILE_P]
    q00m = jnp.where(q00 < 0, q00 + HW_pad, q00)
    q_col = jax.lax.broadcasted_iota(jnp.int32, (HW_pad, TILE_P), 0)
    eq = q_col == q00m                                            # [HW_pad, TILE_P]

    # Separable build: ~6 full-tile VPU passes + 2 XLU rolls.
    tmp = jnp.where(eq, ax0, 0.0) + pltpu.roll(jnp.where(eq, ax1, 0.0), 1, 0)
    Mt = tmp * ay0 + pltpu.roll(tmp, W, 0) * ay1

    if use_bf16:
        Mt = Mt.astype(jnp.bfloat16)           # src_ref already bf16 (wrapper)

    # The gather as a single MXU matmul: out[C, P] = src[C, Q] @ Mt[Q, P].
    # f32 path keeps Mosaic's default (accurate) f32 matmul; the bf16 decision
    # is deliberate via use_bf16_matmul (f32 accumulation either way).
    out_ref[0] = jnp.dot(src_ref[0], Mt,
                         preferred_element_type=jnp.float32).astype(out_ref.dtype)


def _vmem_capacity_bytes():
    try:
        return int(pltpu.get_tpu_info().vmem_capacity_bytes)
    except Exception:
        return 64 * 1024 * 1024                # conservative (v7x-sized) fallback


def _choose_tiling(HW, C, src_itemsize, vmem_limit):
    """Pick the largest lane-dense output tile (256-aligned preferred, up to
    1024) whose ~4 live [HW_pad, TILE_P] build temporaries plus pipelined
    src/out/flow blocks fit the VMEM budget; pad HW up to a multiple of the
    chosen tile (never shrink to 128 just because HW_pad isn't divisible).

    Returns (tile_p, hw_pad, single_buffer_src)."""
    hw128 = -(-HW // 128) * 128
    candidates = [c for c in (1024, 512, 256) if c <= hw128] + [128]
    for tile_p in candidates:
        hw_pad = -(-HW // tile_p) * tile_p

        def vmem_need(src_bufs):
            return (4 * hw_pad * tile_p * 4                 # Mt build temps (f32)
                    + src_bufs * C * hw_pad * src_itemsize  # src block(s)
                    + 2 * C * tile_p * 4                    # double-buffered out
                    + 2 * 2 * tile_p * 4)                   # double-buffered flow

        if vmem_need(2) <= vmem_limit:
            return tile_p, hw_pad, False
        if vmem_need(1) <= vmem_limit:
            return tile_p, hw_pad, True
    return 128, hw128, True


def spatial_transformer(src, flow, *, use_bf16_matmul=False):
    """2-D SpatialTransformer forward (bilinear, align_corners=True, zeros pad)."""
    N, C, H, W = src.shape
    assert flow.shape == (N, 2, H, W)
    HW = H * W

    # Generation-aware VMEM budget: ~75% of physical VMEM
    # (~48 MiB on v7x's 64 MiB; ~96 MiB on v5e/v6e's 128 MiB).
    vmem_limit = int(_vmem_capacity_bytes() * 0.75)

    src_itemsize = 2 if use_bf16_matmul else 4
    tile_p, hw_pad, single_buffer_src = _choose_tiling(HW, C, src_itemsize,
                                                       vmem_limit)
    pad = hw_pad - HW
    num_p = hw_pad // tile_p

    src_dtype = jnp.bfloat16 if use_bf16_matmul else jnp.float32
    src_f = jnp.pad(src.reshape(N, C, HW).astype(jnp.float32),
                    ((0, 0), (0, 0), (0, pad))).astype(src_dtype)

    # Fold the identity grid into flow (absolute sampling coordinates); the
    # PyTorch normalize -> grid_sample(align_corners=True) unnormalize round
    # trip cancels algebraically, so coords are simply row+fy, col+fx.
    rows = jnp.broadcast_to(jnp.arange(H, dtype=jnp.float32)[:, None], (H, W))
    cols = jnp.broadcast_to(jnp.arange(W, dtype=jnp.float32)[None, :], (H, W))
    grid_rc = jnp.stack([rows, cols], axis=0)                      # [2, H, W]
    flow_abs = flow.astype(jnp.float32) + grid_rc[None]
    flow_f = jnp.pad(flow_abs.reshape(N, 2, HW), ((0, 0), (0, 0), (0, pad)))

    src_spec_kwargs = {}
    if single_buffer_src:
        # src's block index is constant over the inner p axis; dropping its
        # second pipeline buffer reclaims C*HW_pad bytes of VMEM (v7x-tight).
        src_spec_kwargs["pipeline_mode"] = pl.Buffered(1)
    src_spec = pl.BlockSpec((1, C, hw_pad), lambda n, p: (n, 0, 0),
                            **src_spec_kwargs)

    kernel = functools.partial(_spatial_transformer_kernel, H=H, W=W,
                               HW_pad=hw_pad, TILE_P=tile_p,
                               use_bf16=use_bf16_matmul)

    out = pl.pallas_call(
        kernel,
        out_shape=jax.ShapeDtypeStruct((N, C, hw_pad), jnp.float32),
        grid_spec=pltpu.PrefetchScalarGridSpec(
            num_scalar_prefetch=0,
            grid=(N, num_p),                                       # p innermost
            in_specs=[
                pl.BlockSpec((1, 2, tile_p), lambda n, p: (n, 0, p)),  # abs coords
                src_spec,                                              # src (resident over p)
            ],
            out_specs=pl.BlockSpec((1, C, tile_p), lambda n, p: (n, 0, p)),
        ),
        compiler_params=pltpu.CompilerParams(
            dimension_semantics=("parallel", "parallel"),
            vmem_limit_bytes=vmem_limit,
        ),
    )(flow_f, src_f)

    return out[:, :, :HW].reshape(N, C, H, W)


def _reference_spatial_transformer(src, flow):
    """Pure-JAX reference of the PyTorch module (grid_sample bilinear, zeros,
    align_corners=True), keeping the explicit normalize->unnormalize round trip."""
    N, C, H, W = src.shape
    f32 = jnp.float32
    row = jnp.arange(H, dtype=f32)[:, None]        # [H, 1]
    col = jnp.arange(W, dtype=f32)[None, :]        # [1, W]

    y = row + flow[:, 0]                           # [N, H, W]
    x = col + flow[:, 1]
    y = ((2.0 * (y / (H - 1) - 0.5)) + 1.0) * 0.5 * (H - 1)
    x = ((2.0 * (x / (W - 1) - 0.5)) + 1.0) * 0.5 * (W - 1)

    y0 = jnp.floor(y)
    x0 = jnp.floor(x)
    y1 = y0 + 1.0
    x1 = x0 + 1.0
    wy1 = y - y0
    wy0 = 1.0 - wy1
    wx1 = x - x0
    wx0 = 1.0 - wx1

    def sample_one(src_n, yc, xc, w):
        valid = ((yc >= 0) & (yc <= H - 1) & (xc >= 0) & (xc <= W - 1)).astype(f32)
        yi = jnp.clip(yc, 0, H - 1).astype(jnp.int32)
        xi = jnp.clip(xc, 0, W - 1).astype(jnp.int32)
        vals = src_n[:, yi, xi]                    # [C, H, W]
        return vals * (w * valid)[None]

    def per_batch(src_n, y0n, x0n, y1n, x1n, wy0n, wx0n, wy1n, wx1n):
        out = sample_one(src_n, y0n, x0n, wy0n * wx0n)
        out += sample_one(src_n, y0n, x1n, wy0n * wx1n)
        out += sample_one(src_n, y1n, x0n, wy1n * wx0n)
        out += sample_one(src_n, y1n, x1n, wy1n * wx1n)
        return out

    return jax.vmap(per_batch)(src, y0, x0, y1, x1, wy0, wx0, wy1, wx1)


if __name__ == "__main__":
    key = jax.random.PRNGKey(0)
    k1, k2, k3, k4, k5, k6 = jax.random.split(key, 6)

    # Case 1: lane-aligned HW, exact f32 matmul path.
    N, C, H, W = 2, 4, 16, 16
    src = jax.random.normal(k1, (N, C, H, W), dtype=jnp.float32)
    # Scale flow so some sample points land out of bounds (tests zero padding).
    flow = 3.0 * jax.random.normal(k2, (N, 2, H, W), dtype=jnp.float32)
    out = jax.block_until_ready(spatial_transformer(src, flow))
    ref = _reference_spatial_transformer(src, flow)
    assert out.shape == (N, C, H, W)
    assert jnp.allclose(out, ref, atol=1e-4, rtol=1e-4), "mismatch vs reference (16x16)"

    # Case 2: non-128-multiple HW exercises the lane-padding path.
    src2 = jax.random.normal(k3, (1, 3, 12, 10), dtype=jnp.float32)
    flow2 = 2.5 * jax.random.normal(k4, (1, 2, 12, 10), dtype=jnp.float32)
    out2 = jax.block_until_ready(spatial_transformer(src2, flow2))
    ref2 = _reference_spatial_transformer(src2, flow2)
    assert out2.shape == (1, 3, 12, 10)
    assert jnp.allclose(out2, ref2, atol=1e-4, rtol=1e-4), "mismatch vs reference (12x10)"

    # Case 3: bf16 matmul fast path (v6e/v7x), looser tolerance.
    src3 = jax.random.normal(k5, (1, 16, 16, 16), dtype=jnp.float32)
    flow3 = 3.0 * jax.random.normal(k6, (1, 2, 16, 16), dtype=jnp.float32)
    out3 = jax.block_until_ready(spatial_transformer(src3, flow3, use_bf16_matmul=True))
    ref3 = _reference_spatial_transformer(src3, flow3)
    assert jnp.allclose(out3, ref3, atol=5e-2, rtol=5e-2), "mismatch vs reference (bf16)"

    print("KERNEL_OK")
</pallas_src>

<mosaic_0001>
module attributes {stable_mosaic.version = 11 : i64} {
  func.func @_spatial_transformer_kernel(%arg0: i32, %arg1: i32, %arg2: memref<1x2x256xf32, #tpu.memory_space<vmem>>, %arg3: memref<1x4x256xf32, #tpu.memory_space<vmem>>, %arg4: memref<1x4x256xf32, #tpu.memory_space<vmem>>) attributes {dimension_semantics = [#tpu.dimension_semantics<parallel>, #tpu.dimension_semantics<parallel>], iteration_bounds = array<i64: 2, 1>, scalar_prefetch = 0 : i64, scratch_operands = 0 : i64, tpu.core_type = #tpu.core_type<tc>, window_params = [{transform_indices = @transform_0, window_bounds = array<i64: 1, 2, 256>}, {transform_indices = @transform_1, window_bounds = array<i64: 1, 4, 256>}, {transform_indices = @transform_2, window_bounds = array<i64: 1, 4, 256>}]} {
    %c0 = arith.constant 0 : index
    %c0_0 = arith.constant 0 : index
    %c0_1 = arith.constant 0 : index
    %0 = vector.load %arg2[%c0, %c0_0, %c0_1] : memref<1x2x256xf32, #tpu.memory_space<vmem>>, vector<1x1x256xf32>
    %1 = vector.shape_cast %0 : vector<1x1x256xf32> to vector<1x256xf32>
    %c0_2 = arith.constant 0 : index
    %c1 = arith.constant 1 : index
    %c0_3 = arith.constant 0 : index
    %2 = vector.load %arg2[%c0_2, %c1, %c0_3] : memref<1x2x256xf32, #tpu.memory_space<vmem>>, vector<1x1x256xf32>
    %3 = vector.shape_cast %2 : vector<1x1x256xf32> to vector<1x256xf32>
    %4 = math.floor %1 : vector<1x256xf32>
    %5 = math.floor %3 : vector<1x256xf32>
    %6 = arith.subf %1, %4 : vector<1x256xf32>
    %7 = arith.subf %3, %5 : vector<1x256xf32>
    %cst = arith.constant 0.000000e+00 : f32
    %8 = vector.broadcast %cst : f32 to vector<1x256xf32>
    %9 = arith.cmpf oge, %5, %8 : vector<1x256xf32>
    %cst_4 = arith.constant 1.500000e+01 : f32
    %10 = vector.broadcast %cst_4 : f32 to vector<1x256xf32>
    %11 = arith.cmpf ole, %5, %10 : vector<1x256xf32>
    %12 = arith.andi %9, %11 : vector<1x256xi1>
    %cst_5 = arith.constant 1.000000e+00 : f32
    %13 = vector.broadcast %cst_5 : f32 to vector<1x256xf32>
    %14 = arith.subf %13, %7 : vector<1x256xf32>
    %cst_6 = arith.constant 0.000000e+00 : f32
    %15 = vector.broadcast %cst_6 : f32 to vector<1x256xf32>
    %16 = arith.select %12, %14, %15 : vector<1x256xi1>, vector<1x256xf32>
    %cst_7 = arith.constant -1.000000e+00 : f32
    %17 = vector.broadcast %cst_7 : f32 to vector<1x256xf32>
    %18 = arith.cmpf oge, %5, %17 : vector<1x256xf32>
    %cst_8 = arith.constant 1.400000e+01 : f32
    %19 = vector.broadcast %cst_8 : f32 to vector<1x256xf32>
    %20 = arith.cmpf ole, %5, %19 : vector<1x256xf32>
    %21 = arith.andi %18, %20 : vector<1x256xi1>
    %cst_9 = arith.constant 0.000000e+00 : f32
    %22 = vector.broadcast %cst_9 : f32 to vector<1x256xf32>
    %23 = arith.select %21, %7, %22 : vector<1x256xi1>, vector<1x256xf32>
    %cst_10 = arith.constant 0.000000e+00 : f32
    %24 = vector.broadcast %cst_10 : f32 to vector<1x256xf32>
    %25 = arith.cmpf oge, %4, %24 : vector<1x256xf32>
    %cst_11 = arith.constant 1.500000e+01 : f32
    %26 = vector.broadcast %cst_11 : f32 to vector<1x256xf32>
    %27 = arith.cmpf ole, %4, %26 : vector<1x256xf32>
    %28 = arith.andi %25, %27 : vector<1x256xi1>
    %cst_12 = arith.constant 1.000000e+00 : f32
    %29 = vector.broadcast %cst_12 : f32 to vector<1x256xf32>
    %30 = arith.subf %29, %6 : vector<1x256xf32>
    %cst_13 = arith.constant 0.000000e+00 : f32
    %31 = vector.broadcast %cst_13 : f32 to vector<1x256xf32>
    %32 = arith.select %28, %30, %31 : vector<1x256xi1>, vector<1x256xf32>
    %cst_14 = arith.constant -1.000000e+00 : f32
    %33 = vector.broadcast %cst_14 : f32 to vector<1x256xf32>
    %34 = arith.cmpf oge, %4, %33 : vector<1x256xf32>
    %cst_15 = arith.constant 1.400000e+01 : f32
    %35 = vector.broadcast %cst_15 : f32 to vector<1x256xf32>
    %36 = arith.cmpf ole, %4, %35 : vector<1x256xf32>
    %37 = arith.andi %34, %36 : vector<1x256xi1>
    %cst_16 = arith.constant 0.000000e+00 : f32
    %38 = vector.broadcast %cst_16 : f32 to vector<1x256xf32>
    %39 = arith.select %37, %6, %38 : vector<1x256xi1>, vector<1x256xf32>
    %40 = arith.fptosi %4 : vector<1x256xf32> to vector<1x256xi32>
    %c16_i32 = arith.constant 16 : i32
    %41 = vector.broadcast %c16_i32 : i32 to vector<1x256xi32>
    %42 = arith.muli %40, %41 : vector<1x256xi32>
    %43 = arith.fptosi %5 : vector<1x256xf32> to vector<1x256xi32>
    %44 = arith.addi %42, %43 : vector<1x256xi32>
    %c0_i32 = arith.constant 0 : i32
    %45 = vector.broadcast %c0_i32 : i32 to vector<1x256xi32>
    %46 = arith.cmpi slt, %44, %45 : vector<1x256xi32>
    %c256_i32 = arith.constant 256 : i32
    %47 = vector.broadcast %c256_i32 : i32 to vector<1x256xi32>
    %48 = arith.addi %44, %47 : vector<1x256xi32>
    %49 = arith.select %46, %48, %44 : vector<1x256xi1>, vector<1x256xi32>
    %50 = tpu.iota {dimensions = array<i32: 0>} : vector<256x256xi32>
    %51 = vector.broadcast %49 : vector<1x256xi32> to vector<256x256xi32>
    %52 = arith.cmpi eq, %50, %51 : vector<256x256xi32>
    %cst_17 = arith.constant 0.000000e+00 : f32
    %53 = vector.shape_cast %16 : vector<1x256xf32> to vector<1x256xf32>
    %54 = vector.broadcast %53 : vector<1x256xf32> to vector<256x256xf32>
    %55 = vector.broadcast %cst_17 : f32 to vector<256x256xf32>
    %56 = arith.select %52, %54, %55 : vector<256x256xi1>, vector<256x256xf32>
    %cst_18 = arith.constant 0.000000e+00 : f32
    %57 = vector.shape_cast %23 : vector<1x256xf32> to vector<1x256xf32>
    %58 = vector.broadcast %57 : vector<1x256xf32> to vector<256x256xf32>
    %59 = vector.broadcast %cst_18 : f32 to vector<256x256xf32>
    %60 = arith.select %52, %58, %59 : vector<256x256xi1>, vector<256x256xf32>
    %c1_i32 = arith.constant 1 : i32
    %61 = tpu.dynamic_rotate %60 by %c1_i32 dim 0 : vector<256x256xf32>, i32 -> vector<256x256xf32>
    %62 = arith.addf %56, %61 : vector<256x256xf32>
    %63 = vector.broadcast %32 : vector<1x256xf32> to vector<256x256xf32>
    %64 = arith.mulf %62, %63 : vector<256x256xf32>
    %c16_i32_19 = arith.constant 16 : i32
    %65 = tpu.dynamic_rotate %62 by %c16_i32_19 dim 0 : vector<256x256xf32>, i32 -> vector<256x256xf32>
    %66 = vector.broadcast %39 : vector<1x256xf32> to vector<256x256xf32>
    %67 = arith.mulf %65, %66 : vector<256x256xf32>
    %68 = arith.addf %64, %67 : vector<256x256xf32>
    %c0_20 = arith.constant 0 : index
    %c0_21 = arith.constant 0 : index
    %c0_22 = arith.constant 0 : index
    %69 = vector.load %arg3[%c0_20, %c0_21, %c0_22] : memref<1x4x256xf32, #tpu.memory_space<vmem>>, vector<1x4x256xf32>
    %70 = vector.shape_cast %69 : vector<1x4x256xf32> to vector<4x256xf32>
    %cst_23 = arith.constant dense<0.000000e+00> : vector<4x256xf32>
    %71 = tpu.matmul %70, %68, %cst_23 {dimension_numbers = #tpu.dot_dimension_numbers<[1], [0], [0], [1], [0, 0, 1, 1], [], []>} : vector<4x256xf32>, vector<256x256xf32>, vector<4x256xf32> -> vector<4x256xf32>
    %c0_24 = arith.constant 0 : index
    %c0_25 = arith.constant 0 : index
    %c0_26 = arith.constant 0 : index
    %72 = vector.load %arg4[%c0_24, %c0_25, %c0_26] : memref<1x4x256xf32, #tpu.memory_space<vmem>>, vector<1x4x256xf32>
    %73 = vector.shape_cast %72 : vector<1x4x256xf32> to vector<4x256xf32>
    %74 = vector.shape_cast %71 : vector<4x256xf32> to vector<1x4x256xf32>
    tpu.vector_store %arg4[%c0_24, %c0_25, %c0_26], %74 {strides = array<i32>} : memref<1x4x256xf32, #tpu.memory_space<vmem>>, vector<1x4x256xf32>,
    return
  }
  func.func @transform_0(%arg0: i32, %arg1: i32) -> (i32, i32, i32) {
    %c0_i32 = arith.constant 0 : i32
    %c0_i32_0 = arith.constant 0 : i32
    return %arg0, %c0_i32, %arg1 : i32, i32, i32
  }
  func.func @transform_1(%arg0: i32, %arg1: i32) -> (i32, i32, i32) {
    %c0_i32 = arith.constant 0 : i32
    %c0_i32_0 = arith.constant 0 : i32
    %c0_i32_1 = arith.constant 0 : i32
    return %arg0, %c0_i32, %c0_i32_0 : i32, i32, i32
  }
  func.func @transform_2(%arg0: i32, %arg1: i32) -> (i32, i32, i32) {
    %c0_i32 = arith.constant 0 : i32
    %c0_i32_0 = arith.constant 0 : i32
    return %arg0, %c0_i32, %arg1 : i32, i32, i32
  }
}

</mosaic_0001>

<bundles_post_ra>
// kernel: tpu_custom_call.1
= control target key start
LH: loop header
LB: loop body
LE: loop exit
PB: predicated region body
PF: predicated region fallthrough
CT: control target
= control target key end

     0   :  { %7 = vsyncpa [#allocation3], 0  ;;  %s2388_s0 = inlined_call_operand.hbm [shape: f32[2,2,256], index: 0, kind: input, shape index: {}]   ;;  %s2389_s1 = inlined_call_operand.hbm [shape: f32[2,4,256], index: 1, kind: input, shape index: {}]   ;;  %s2390_s2 = inlined_call_operand.hbm [shape: f32[2,4,256], index: 2, kind: output, shape index: {}]  }
   0x1   :  { %9 = vsyncpa [#allocation3 + $0x1], 0 }
   0x2   :  { %10 = vsyncpa [#allocation6], 0 }
   0x3   :  { %12 = vsyncpa [#allocation6 + $0x1], 0 }
   0x4   :  { %13 = vsyncpa [#allocation4], 0 }
   0x5   :  { %15 = vsyncpa [#allocation4 + $0x1], 0  ;;  %s1441_s9 = smov 0   ;;  %s1443_s10 = smov 0  }
   0x6   :  { %s1445_s11 = smov 0   ;;  %s1447_s12 = smov 0  }
   0x7   :  { %s1449_s13 = smov 0   ;;  %s1451_s14 = smov 0  }
   0x8 LB: > { %s1116_s15 = sadd.s32 4294967295, %s1421_s14   ;;  %s1117_s16 = sadd.s32 4294967294, %s1421_s14   ;;  %s1421_s14 = sphi %s1451_s14, %s21_s14   ;;  %s1417_s13 = sphi %s1449_s13, %s2444_s13   ;;  %s1413_s12 = sphi %s1447_s12, %s2443_s12   ;;  %s1409_s11 = sphi %s1445_s11, %s2442_s11   ;;  %s1405_s10 = sphi %s1443_s10, %s2441_s10   ;;  %s1401_s9 = sphi %s1441_s9, %s2440_s9  }
   0x9   : > { %s33_s17 = sadd.s32 1, %s1417_s13  ;;  %s42_s18 = sadd.s32 1, %s1409_s11 }
   0xa   : > { %p35_p0 = scmp.ge.s32.totalorder %s33_s17, 2  ;;  %p49_p1 = scmp.ne.s32.totalorder %s1409_s11, %s1405_s10 }
   0xb   : > { %p50_p2 = scmp.eq.s32.totalorder %s1421_s14, 0  ;;  %p55_p3 = scmp.ne.s32.totalorder %s1405_s10, %s1401_s9 }
   0xc   : > { %s2446_s17 = smov (%p35_p0, %s33_s17), 0  ;;  %p56_p5 = scmp.eq.s32.totalorder %s1116_s15, 0 }
   0xd   : > { %p1482_p4 = por %p50_p2, %p49_p1  ;;  %s37_s20 = ssub.s32 %s1417_s13, %s2446_s17 }
   0xe   : > { %p107_p6 = scmp.eq.s32.totalorder %s1116_s15, 1  ;;  %p40_p7 = scmp.eq.s32.totalorder %s37_s20, 0 }
   0xf   : > { %p1488_p8 = por %p56_p5, %p55_p3  ;;  %p113_p10 = scmp.eq.s32.totalorder %s1117_s16, 1 }
  0x10   : > { %p1492_p9 = por %p107_p6, %p49_p1  ;;  %p1224_p13 = scmp.lt.s32.totalorder %s1421_s14, 2 }
  0x11   : > { %s2405_s21 = scalar_select %p1488_p8, 1, 0 }
  0x12   : > { %s2406_s22 = scalar_select %p1492_p9, 1, 0 }
  0x13   : > { %s1497_s23 = scalar_select %p40_p7, %s1409_s11, %s42_s18  }
  0x14   : > { %p1499_p11 = por %p113_p10, %p55_p3  ;;  %s1506_s25 = sand.u32 1, %s1409_s11  }
  0x15   : > { %s1120_s26 = sshll.u32 %s1506_s25, 2  ;;  %s1136_s27 = sshll.u32 %s1417_s13, 6 }
  0x16   : > { %s2407_s24 = scalar_select %p1499_p11, 1, 0 }
  0x17   : > { %s1513_s30 = scalar_lea.hbm %s2388_s0, %s1136_s27  ;;  %s137_s3 = scalar_lea.vmem [#allocation2], %s1120_s26 }
  0x18   : > { %s147_s4 = sshll.u32 %s137_s3, 4  ;;  %p1519_p0 = pnand %p1224_p13, %p1482_p4  ;;  %s1515_s4 = int_to_ptr.vmem [resolvable:$true] %s147_s4 }
  0x19   : > { %s134_s6 = scalar_lea.sflag [#allocation3], %s1506_s25  ;;  %s1275_s7 = scalar_lea.hbm %s1513_s30, 64 }
  0x1a   : > { %p1276_p3 = scmp.ne.s32.totalorder %s1513_s30, %s1275_s7  ;;  %p1277_p5 = pneg %p1519_p0 }
  0x1b   : > { %s1280_s16 = scalar_lea.hbm %s2388_s0, 128  ;;  %p1281_p4 = scmp.lt.u32.totalorder %s1513_s30, %s2388_s0 }
  0x1c   : > { %p1278_p6 = pnand %p1277_p5, %p1276_p3  ;;  %p1282_p10 = scmp.lt.u32.totalorder %s1280_s16, %s1275_s7 }
  0x1d   : > { %p1284_p12 = scmp.lt.u32.totalorder %s1275_s7, %s1513_s30 }
  0x1e   : > { %p1279_p7 = pneg %p1278_p6  ;;  %p1283_p13 = por %p1282_p10, %p1281_p4 }
  0x20   : > { %p1285_p1 = por %p1284_p12, %p1283_p13 }
  0x22   : > { %p1286_p2 = pnand %p1285_p1, %p1279_p7 }
  0x24   : > { %1289 = shalt.err (!%p1286_p2)
}
  0x25   : > { %s1290_s20 = scalar_lea.vmem %s1515_s4, 64  ;;  %s1423_s26 = smov [#allocation2]  }
  0x26   : > { %p1291_p3 = scmp.ne.s32.totalorder %s1515_s4, %s1290_s20  ;;  %s1295_s27 = sshll.u32 %s1423_s26, 4  ;;  %s1296_s27 = int_to_ptr.vmem [resolvable:$false] %s1295_s27 }
  0x27   : > { %s1297_s28 = scalar_lea.vmem %s1296_s27, 128  ;;  %p1298_p9 = scmp.lt.s32.totalorder %s1515_s4, %s1296_s27 }
  0x28   : > { %p1293_p6 = pnand %p1291_p3, %p1277_p5  ;;  %p1299_p4 = scmp.lt.s32.totalorder %s1297_s28, %s1290_s20 }
  0x2a   : > { %p1294_p11 = pneg %p1293_p6  ;;  %p1300_p10 = por %p1299_p4, %p1298_p9 }
  0x2c   : > { %p1301_p12 = pnand %p1300_p10, %p1294_p11 }
  0x2e   : > { %1304 = shalt.err (!%p1301_p12)
}
  0x2f   : > { %1216 = dma.hbm_to_vmem [thread:$0]  (!%p1519_p0), %s1513_s30, 64, %s1515_s4, %s134_s6  }
  0x30   : > { %p2409_p1 = scmp.lt.s32.totalorder %s1421_s14, 3  ;;  %p2410_p2 = scmp.ge.s32.totalorder %s1421_s14, 1 }
  0x31   : > { %s1123_s3 = sshll.u32 %s1506_s25, 3  ;;  %s1137_s7 = sshll.u32 %s1417_s13, 7 }
  0x32   : > { %p1555_p7 = pnand %p2410_p2, %p2409_p1  ;;  %s1564_s16 = scalar_lea.hbm %s2389_s1, %s1137_s7 }
  0x33   : > { %s158_s18 = scalar_lea.vmem [#allocation5], %s1123_s3  ;;  %s155_s30 = scalar_lea.sflag [#allocation6], %s1506_s25 }
  0x34   : > { %s2411_s29 = scalar_select %p1555_p7, 1, 0 }
  0x35   : > { %s166_s19 = sshll.u32 %s158_s18, 4  ;;  %s1305_s4 = scalar_lea.hbm %s1564_s16, 128  ;;  %s167_s19 = int_to_ptr.vmem [resolvable:$true] %s166_s19 }
  0x36   : > { %p1306_p9 = scmp.ne.s32.totalorder %s1564_s16, %s1305_s4  ;;  %s1310_s26 = scalar_lea.hbm %s2389_s1, 256 }
  0x37   : > { %p1311_p3 = scmp.lt.u32.totalorder %s1564_s16, %s2389_s1  ;;  %p1312_p6 = scmp.lt.u32.totalorder %s1310_s26, %s1305_s4 }
  0x38   : > { %p1308_p11 = pnand %p1306_p9, %p1277_p5  ;;  %p1314_p10 = scmp.lt.u32.totalorder %s1305_s4, %s1564_s16 }
  0x39   : > { %p1313_p4 = por %p1312_p6, %p1311_p3 }
  0x3a   : > { %p1309_p13 = pneg %p1308_p11 }
  0x3b   : > { %p1315_p12 = por %p1314_p10, %p1313_p4 }
  0x3d   : > { %p1316_p1 = pnand %p1315_p12, %p1309_p13 }
  0x3f   : > { %1319 = shalt.err (!%p1316_p1)
}
  0x40   : > { %s1320_s25 = scalar_lea.vmem %s167_s19, 128  ;;  %s1424_s3 = smov [#allocation5]  }
  0x41   : > { %p1321_p2 = scmp.ne.s32.totalorder %s167_s19, %s1320_s25  ;;  %s1325_s7 = sshll.u32 %s1424_s3, 4  ;;  %s1326_s7 = int_to_ptr.vmem [resolvable:$false] %s1325_s7 }
  0x42   : > { %s1327_s8 = scalar_lea.vmem %s1326_s7, 256  ;;  %p1328_p8 = scmp.lt.s32.totalorder %s167_s19, %s1326_s7 }
  0x43   : > { %p1323_p9 = pnand %p1321_p2, %p1277_p5  ;;  %p1329_p7 = scmp.lt.s32.totalorder %s1327_s8, %s1320_s25 }
  0x45   : > { %p1324_p11 = pneg %p1323_p9  ;;  %p1330_p3 = por %p1329_p7, %p1328_p8 }
  0x47   : > { %p1331_p6 = pnand %p1330_p3, %p1324_p11 }
  0x49   : > { %1334 = shalt.err (!%p1331_p6)
}
  0x4a   : > { %1219 = dma.hbm_to_vmem [thread:$0]  (!%p1519_p0), %s1564_s16, 128, %s167_s19, %s155_s30  }
  0x4b   : > { %p2412_p13 = scmp.ne.s32.totalorder %s2411_s29, 0 }
  0x4d   : > { %175 = sbr.rel (%p2412_p13) target bundleno = 503 (0x1f7), region = 28 }
  0x54   : > { %s1589_s15 = sand.u32 1, %s1405_s10   ;;  %p2413_p5 = scmp.ne.s32.totalorder %s2405_s21, 0 }
  0x55   : > { %s1127_s18 = sshll.u32 %s1589_s15, 2  ;;  %s178_s4 = scalar_lea.sflag [#allocation3], %s1589_s15 }
  0x56   : > { %s181_s6 = scalar_lea.vmem [#allocation2], %s1127_s18 }
  0x57   : > { %1388 = dma.done.wait (%p2413_p5), %s178_s4, 64  }
  0x58   : > { %1390 = vsyncadd (%p2413_p5), %s178_s4, 4294967232  ;;  %s1128_s5 = sshll.u32 %s1589_s15, 3  ;;  %s187_s29 = scalar_lea.sflag [#allocation6], %s1589_s15 }
  0x59   : > { %s1601_s16 = scalar_lea.vmem [#allocation5], %s1128_s5 }
  0x5a   : > { %1392 = dma.done.wait (%p2413_p5), %s187_s29, 128  }
  0x5b   : > { %1394 = vsyncadd (%p2413_p5), %s187_s29, 4294967168  ;;  %v250_v0 = vlaneseq  ;;  %v218_v2 = vld [vmem:[%s181_s6] ss:$2 sm:$0x3]  ;;  %s1138_s21 = sshll.u32 %s1413_s12, 7  ;;  %s215_s19 = scalar_lea.vmem [#allocation7], %s1128_s5 }
  0x5c   : > { %v1130_v3 = vld [vmem:[%s181_s6 + $0x1] ss:$2 sm:$0x3]  ;;  %v221_v4 = vfloor.f32 %v218_v2  ;;  %s1009_s30 = sshll.u32 %s215_s19, 4  ;;  %s2339_s27 = scalar_lea.hbm %s2390_s2, %s1138_s21  ;;  %s2341_s30 = int_to_ptr.vmem [resolvable:$true] %s1009_s30 }
  0x5d   : > { %v1607_v1 = vshrl.u32 %v250_v0, 7  ;;  %v222_v5 = vfloor.f32 %v1130_v3  ;;  %s993_s28 = scalar_lea.sflag [#allocation4], %s1589_s15  ;;  %s1335_s25 = scalar_lea.vmem %s2341_s30, 128 }
  0x5e   : > { %v223_v9 = vsub.f32 %v218_v2, %v221_v4  ;;  %vm234_vm5 = vcmp.ge.f32.partialorder %v221_v4, 0.0  ;;  %vm235_vm6 = vcmp.le.f32.partialorder %v221_v4, 15.0  ;;  %vm239_vm8 = vcmp.ge.f32.partialorder %v221_v4, -1.0  ;;  %p1336_p8 = scmp.ne.s32.totalorder %s2341_s30, %s1335_s25  ;;  %p2437_p0 = scmp.ne.s32.totalorder %s2406_s22, 0 }
  0x5f   : > { %v1610_v6 = vsub.s32 0, %v1607_v1  ;;  %v1613_v7 = vsub.s32 1, %v1607_v1  ;;  %v1616_v8 = vadd.s32 8, %v1607_v1  ;;  %v224_v10 = vsub.f32 %v1130_v3, %v222_v5  ;;  %vm1629_vm10 = vmand %vm234_vm5, %vm235_vm6  ;;  %s1425_s12 = smov [#allocation7]  }
  0x60   : > { %vm225_vm0 = vcmp.ge.f32.partialorder %v222_v5, 0.0  ;;  %vm226_vm1 = vcmp.le.f32.partialorder %v222_v5, 15.0  ;;  %vm230_vm3 = vcmp.ge.f32.partialorder %v222_v5, -1.0  ;;  %vm231_vm4 = vcmp.le.f32.partialorder %v222_v5, 14.0  ;;  %p1337_p7 = pnand %p1336_p8, %p2437_p0  ;;  %s1339_s3 = sshll.u32 %s1425_s12, 4  ;;  %s1340_s3 = int_to_ptr.vmem [resolvable:$false] %s1339_s3 }
  0x61   : > { %vm1618_vm2 = vmand %vm225_vm0, %vm226_vm1  ;;  %v228_v12 = vsub.f32 1.0, %v224_v10  ;;  %vm240_vm9 = vcmp.le.f32.partialorder %v221_v4, 14.0  ;;  %v1627_v14 = vadd.s32 232, %v1607_v1  ;;  %v237_v16 = vsub.f32 1.0, %v223_v9  ;;  %s1341_s7 = scalar_lea.vmem %s1340_s3, 256  ;;  %p1342_p10 = scmp.lt.s32.totalorder %s2341_s30, %s1340_s3 }
  0x62   : > { %vm1622_vm7 = vmand %vm230_vm3, %vm231_vm4  ;;  %v1203_v17 = vtrunc.f32 %v221_v4  ;;  %v1205_v18 = vtrunc.f32 %v222_v5  ;;  %v1634_v19 = vadd.s32 240, %v1607_v1  ;;  %v1637_v20 = vadd.s32 248, %v1607_v1  ;;  %p1338_p4 = pneg %p1337_p7  ;;  %p1343_p12 = scmp.lt.s32.totalorder %s1341_s7, %s1335_s25 }
  0x63   : > { %2418 = vst [vmem:[#allocation11_spill] sm:$0xff] %v1627_v14  ;;  %vm241_vm11 = vmand %vm239_vm8, %vm240_vm9  ;;  %v1640_v21 = vadd.s32 16, %v1607_v1  ;;  %v1643_v22 = vadd.s32 24, %v1607_v1  ;;  %v1646_v23 = vadd.s32 32, %v1607_v1  ;;  %v1649_v26 = vadd.s32 40, %v1607_v1 }
  0x64   : > { %v1204_v24 = vcvt.f32.s32 %v1203_v17  ;;  %v1206_v25 = vcvt.f32.s32 %v1205_v18  ;;  %v1652_v27 = vadd.s32 48, %v1607_v1  ;;  %v229_v28 = vsel %vm1618_vm2, %v228_v12, 0.0  ;;  %p1344_p1 = por %p1343_p12, %p1342_p10 }
  0x65   : > { %v233_v29 = vsel %vm1622_vm7, %v224_v10, 0.0  ;;  %v1659_v30 = vadd.s32 56, %v1607_v1  ;;  %v1662_v31 = vadd.s32 64, %v1607_v1  ;;  %v238_v32 = vsel %vm1629_vm10, %v237_v16, 0.0 }
  0x66   : > { %v242_v33 = vsel %vm241_vm11, %v223_v9, 0.0  ;;  %v244_v34 = vmul.u32 16, %v1204_v24  ;;  %v1667_v35 = vadd.s32 72, %v1607_v1  ;;  %v1670_v36 = vadd.s32 80, %v1607_v1  ;;  %p1345_p2 = pnand %p1344_p1, %p1338_p4 }
  0x67   : > { %v1673_v37 = vadd.s32 88, %v1607_v1  ;;  %v1676_v38 = vadd.s32 96, %v1607_v1  ;;  %v1679_v39 = vadd.s32 104, %v1607_v1  ;;  %v1682_v41 = vrot.slane %v229_v28, %v1610_v6 }
  0x68   : > { %v246_v40 = vadd.s32 %v1206_v25, %v244_v34  ;;  %v1685_v42 = vrot.slane %v233_v29, %v1610_v6  ;;  %v1688_v43 = vrot.slane %v233_v29, %v1613_v7  ;;  %v1691_v44 = vrot.slane %v229_v28, %v1613_v7 }
  0x69   : > { %v1694_v45 = vrot.slane %v238_v32, %v1610_v6  ;;  %v1697_v46 = vrot.slane %v238_v32, %v1613_v7  ;;  %v1700_v47 = vrot.slane %v242_v33, %v1610_v6  ;;  %vm569_vm12 = vcmp.lt.s32.totalorder %v1607_v1, 1 }
  0x6a   : > { %vm247_vm13 = vcmp.lt.s32.totalorder %v246_v40, 0  ;;  %v248_v48 = vadd.s32 256, %v246_v40  ;;  %v1704_v49 = vrot.slane %v242_v33, %v1613_v7  ;;  %v1707_v50 = vadd.s32 112, %v1607_v1 }
  0x6b   : > { %v1710_v51 = vadd.s32 120, %v1607_v1  ;;  %v1713_v52 = vadd.s32 128, %v1607_v1  ;;  %v1716_v53 = vadd.s32 136, %v1607_v1  ;;  %v1719_v54 = vadd.s32 144, %v1607_v1 }
  0x6c   : > { %v249_v55 = vsel %vm247_vm13, %v248_v48, %v246_v40  ;;  %v1722_v56 = vadd.s32 152, %v1607_v1  ;;  %v1725_v57 = vadd.s32 160, %v1607_v1  ;;  %v1728_v58 = vadd.s32 168, %v1607_v1 }
  0x6d   : > { %v1731_v59 = vrot.slane %v249_v55, %v1613_v7  ;;  %v1734_v60 = vadd.s32 176, %v1607_v1  ;;  %v1737_v61 = vadd.s32 184, %v1607_v1  ;;  %v1740_v62 = vadd.s32 192, %v1607_v1 }
  0x6e   : > { %v1743_v63 = vrot.slane %v249_v55, %v1610_v6  ;;  %v1746_v0 = vadd.s32 200, %v1607_v1  ;;  %v1749_v2 = vadd.s32 208, %v1607_v1  ;;  %v1752_v3 = vadd.s32 216, %v1607_v1 }
  0x6f   : > { %vm292_vm14 = vcmp.eq.s32.totalorder %v1607_v1, %v1731_v59  ;;  %vm294_vm15 = vcmp.eq.s32.totalorder %v1616_v8, %v1731_v59  ;;  %vm350_vm0 = vcmp.eq.s32.totalorder %v1627_v14, %v1731_v59  ;;  %vm352_vm1 = vcmp.eq.s32.totalorder %v1634_v19, %v1731_v59 }
  0x70   : > { %vm354_vm2 = vcmp.eq.s32.totalorder %v1637_v20, %v1731_v59  ;;  %v367_v4 = vsel %vm292_vm14, %v1691_v44, 0.0  ;;  %v369_v5 = vsel %vm294_vm15, %v1691_v44, 0.0  ;;  %v427_v6 = vsel %vm352_vm1, %v1691_v44, 0.0 }
  0x71   : > { %v429_v7 = vsel %vm354_vm2, %v1691_v44, 0.0  ;;  %v442_v9 = vsel %vm292_vm14, %v1688_v43, 0.0  ;;  %v1770_v10 = vsel %vm294_vm15, %v1688_v43, 0.0  ;;  %v1776_v11 = vsel %vm350_vm0, %v1688_v43, 0.0 }
  0x72   : > { %2421 = vst [vmem:[#allocation12_spill] sm:$0xff] %v1776_v11  ;;  %v502_v12 = vsel %vm352_vm1, %v1688_v43, 0.0  ;;  %v504_v13 = vsel %vm354_vm2, %v1688_v43, 0.0  ;;  %v506_v15 = vrot.slane %v442_v9, 7  ;;  %v2394_v16 = vrot.slane %v1770_v10, 7 }
  0x73   : > { %v2393_v17 = vrot.slane %v1776_v11, 7  ;;  %v566_v18 = vrot.slane %v502_v12, 7  ;;  %v568_v24 = vrot.slane %v504_v13, 7  ;;  %vm291_vm3 = vcmp.eq.s32.totalorder %v1607_v1, %v1743_v63 }
  0x74   : > { %v631_v25 = vsel %vm569_vm12, %v506_v15, %v2394_v16  ;;  %vm293_vm4 = vcmp.eq.s32.totalorder %v1616_v8, %v1743_v63  ;;  %vm349_vm5 = vcmp.eq.s32.totalorder %v1627_v14, %v1743_v63  ;;  %vm351_vm6 = vcmp.eq.s32.totalorder %v1634_v19, %v1743_v63 }
  0x75   : > { %v571_v28 = vsel %vm569_vm12, %v566_v18, %v568_v24  ;;  %v573_v29 = vsel %vm569_vm12, %v2393_v17, %v566_v18  ;;  %v633_v32 = vsel %vm569_vm12, %v568_v24, %v506_v15  ;;  %v637_v33 = vadd.f32 %v631_v25, %v369_v5 }
  0x76   : > { %v635_v34 = vadd.f32 %v633_v32, %v367_v4  ;;  %v1802_v40 = vadd.f32 %v573_v29, %v427_v6  ;;  %v1804_v48 = vadd.f32 %v571_v28, %v429_v7  ;;  %vm353_vm7 = vcmp.eq.s32.totalorder %v1637_v20, %v1743_v63 }
  0x77   : > { %v712_v55 = vmul.f32 %v1697_v46, %v637_v33  ;;  %v366_v9 = vsel %vm291_vm3, %v1682_v41, 0.0  ;;  %v368_v5 = vsel %vm293_vm4, %v1682_v41, 0.0  ;;  %v426_v4 = vsel %vm351_vm6, %v1682_v41, 0.0 }
  0x78   : > { %2422 = vst [vmem:[#allocation13_spill] sm:$0xff] %v1802_v40  ;;  %2423 = vst [vmem:[#allocation14_spill] sm:$0xff] %v1804_v48  ;;  %v710_v6 = vmul.f32 %v1697_v46, %v635_v34  ;;  %v785_v20 = vmul.f32 %v1704_v49, %v1802_v40  ;;  %v787_v7 = vmul.f32 %v1704_v49, %v1804_v48  ;;  %v428_v12 = vsel %vm353_vm7, %v1682_v41, 0.0 }
  0x79   : > { %v441_v13 = vsel %vm291_vm3, %v1685_v42, 0.0  ;;  %v443_v15 = vsel %vm293_vm4, %v1685_v42, 0.0  ;;  %v1839_v18 = vsel %vm349_vm5, %v1685_v42, 0.0  ;;  %v501_v24 = vsel %vm351_vm6, %v1685_v42, 0.0 }
  0x7a   : > { %2424 = vst [vmem:[#allocation15_spill] sm:$0xff] %v1839_v18  ;;  %v849_v25 = vadd.f32 %v785_v20, %v710_v6  ;;  %v851_v28 = vadd.f32 %v787_v7, %v712_v55  ;;  %v503_v29 = vsel %vm353_vm7, %v1685_v42, 0.0  ;;  %v505_v32 = vrot.slane %v441_v13, 7 }
  0x7b   : > { %v507_v17 = vrot.slane %v443_v15, 7  ;;  %v2397_v8 = vrot.slane %v1839_v18, 7  ;;  %v565_v16 = vrot.slane %v501_v24, 7  ;;  %v567_v48 = vrot.slane %v503_v29, 7 }
  0x7c   : > { %v1139_v40 = vpack.c.bf16 %v851_v28, %v849_v25  ;;  %vm296_vm8 = vcmp.eq.s32.totalorder %v1640_v21, %v1731_v59  ;;  %vm298_vm9 = vcmp.eq.s32.totalorder %v1643_v22, %v1731_v59  ;;  %v789_v19 = vmul.f32 %v1704_v49, %v635_v34 }
  0x7d   : > { %v570_v55 = vsel %vm569_vm12, %v565_v16, %v567_v48  ;;  %v572_v6 = vsel %vm569_vm12, %v2397_v8, %v565_v16  ;;  %v630_v20 = vsel %vm569_vm12, %v505_v32, %v507_v17  ;;  %v632_v7 = vsel %vm569_vm12, %v567_v48, %v505_v32 }
  0x7e   : > { %1140 = vmatprep.subr.bf16.mxu0 %v1139_v40  ;;  %v634_v13 = vadd.f32 %v632_v7, %v366_v9  ;;  %v636_v15 = vadd.f32 %v630_v20, %v368_v5  ;;  %v1862_v24 = vadd.f32 %v572_v6, %v426_v4  ;;  %v1864_v34 = vadd.f32 %v570_v55, %v428_v12 }
  0x7f   : > { %v371_v25 = vsel %vm296_vm8, %v1691_v44, 0.0  ;;  %v373_v28 = vsel %vm298_vm9, %v1691_v44, 0.0  ;;  %v446_v29 = vsel %vm296_vm8, %v1688_v43, 0.0  ;;  %v448_v16 = vsel %vm298_vm9, %v1688_v43, 0.0 }
  0x80   : > { %2425 = vst [vmem:[#allocation16_spill] sm:$0xff] %v1862_v24  ;;  %2426 = vst [vmem:[#allocation17_spill] sm:$0xff] %v1864_v34  ;;  %v709_v8 = vmul.f32 %v1694_v45, %v634_v13  ;;  %v711_v18 = vmul.f32 %v1694_v45, %v636_v15  ;;  %v784_v40 = vmul.f32 %v1700_v47, %v1862_v24  ;;  %v510_v9 = vrot.slane %v446_v29, 7 }
  0x81   : > { %v786_v48 = vmul.f32 %v1700_v47, %v1864_v34  ;;  %v512_v5 = vrot.slane %v448_v16, 7  ;;  %v791_v4 = vmul.f32 %v1704_v49, %v637_v33  ;;  %vm295_vm10 = vcmp.eq.s32.totalorder %v1640_v21, %v1743_v63 }
  0x82   : > { %v848_v12 = vadd.f32 %v784_v40, %v709_v8  ;;  %vm297_vm11 = vcmp.eq.s32.totalorder %v1643_v22, %v1743_v63  ;;  %v370_v55 = vsel %vm295_vm10, %v1682_v41, 0.0  ;;  %v2427_v20 = vrot.slane %v1770_v10, 7 }
  0x83   : > { %v850_v32 = vadd.f32 %v786_v48, %v711_v18  ;;  %v627_v6 = vsel %vm569_vm12, %v510_v9, %v512_v5  ;;  %v372_v33 = vsel %vm297_vm11, %v1682_v41, 0.0  ;;  %v445_v29 = vsel %vm295_vm10, %v1685_v42, 0.0 }
  0x84   : > { %v629_v7 = vsel %vm569_vm12, %v2427_v20, %v510_v9  ;;  %v641_v18 = vadd.f32 %v627_v6, %v373_v28  ;;  %v447_v16 = vsel %vm297_vm11, %v1685_v42, 0.0  ;;  %v509_v22 = vrot.slane %v445_v29, 7 }
  0x85   : > { %v1141_v21 = vpack.c.bf16 %v850_v32, %v848_v12  ;;  %v639_v8 = vadd.f32 %v629_v7, %v371_v25  ;;  %v511_v40 = vrot.slane %v447_v16, 7  ;;  %v788_v48 = vmul.f32 %v1700_v47, %v634_v13 }
  0x86   : > { %v790_v34 = vmul.f32 %v1700_v47, %v636_v15  ;;  %v716_v9 = vmul.f32 %v1697_v46, %v641_v18  ;;  %vm300_vm13 = vcmp.eq.s32.totalorder %v1646_v23, %v1731_v59  ;;  %vm302_vm14 = vcmp.eq.s32.totalorder %v1649_v26, %v1731_v59 }
  0x87   : > { %1142 = vmatpush1.bf16.msra.mxu0 %v1141_v21  ;;  %v714_v10 = vmul.f32 %v1697_v46, %v639_v8  ;;  %v626_v25 = vsel %vm569_vm12, %v509_v22, %v511_v40  ;;  %v628_v28 = vsel %vm569_vm12, %v507_v17, %v509_v22  ;;  %v375_v13 = vsel %vm300_vm13, %v1691_v44, 0.0 }
  0x88   : > { %v377_v15 = vsel %vm302_vm14, %v1691_v44, 0.0  ;;  %v855_v32 = vadd.f32 %v791_v4, %v716_v9  ;;  %v638_v6 = vadd.f32 %v628_v28, %v370_v55  ;;  %v640_v20 = vadd.f32 %v626_v25, %v372_v33 }
  0x89   : > { %v853_v12 = vadd.f32 %v789_v19, %v714_v10  ;;  %v450_v7 = vsel %vm300_vm13, %v1688_v43, 0.0  ;;  %v452_v29 = vsel %vm302_vm14, %v1688_v43, 0.0  ;;  %v793_v21 = vmul.f32 %v1704_v49, %v639_v8 }
  0x8a   : > { %v795_v16 = vmul.f32 %v1704_v49, %v641_v18  ;;  %v713_v11 = vmul.f32 %v1694_v45, %v638_v6  ;;  %v715_v17 = vmul.f32 %v1694_v45, %v640_v20  ;;  %v514_v22 = vrot.slane %v450_v7, 7 }
  0x8b   : > { %v1143_v24 = vpack.c.bf16 %v855_v32, %v853_v12  ;;  %v516_v14 = vrot.slane %v452_v29, 7  ;;  %vm299_vm15 = vcmp.eq.s32.totalorder %v1646_v23, %v1743_v63  ;;  %vm301_vm1 = vcmp.eq.s32.totalorder %v1649_v26, %v1743_v63 }
  0x8c   : > { %v792_v19 = vmul.f32 %v1700_v47, %v638_v6  ;;  %v852_v4 = vadd.f32 %v788_v48, %v713_v11  ;;  %v854_v55 = vadd.f32 %v790_v34, %v715_v17  ;;  %v625_v33 = vsel %vm569_vm12, %v512_v5, %v514_v22 }
  0x8d   : > { %1144 = vmatprep.subr.bf16.mxu0 %v1143_v24  ;;  %v374_v8 = vsel %vm299_vm15, %v1682_v41, 0.0  ;;  %v623_v18 = vsel %vm569_vm12, %v514_v22, %v516_v14  ;;  %v643_v10 = vadd.f32 %v625_v33, %v375_v13  ;;  %v376_v9 = vsel %vm301_vm1, %v1682_v41, 0.0 }
  0x8e   : > { %v449_v23 = vsel %vm299_vm15, %v1685_v42, 0.0  ;;  %v1145_v25 = vpack.c.bf16 %v854_v55, %v852_v4  ;;  %v645_v26 = vadd.f32 %v623_v18, %v377_v15  ;;  %v451_v28 = vsel %vm301_vm1, %v1685_v42, 0.0 }
  0x8f   : > { %v513_v24 = vrot.slane %v449_v23, 7  ;;  %v718_v11 = vmul.f32 %v1697_v46, %v643_v10  ;;  %v515_v34 = vrot.slane %v451_v28, 7  ;;  %v794_v5 = vmul.f32 %v1700_v47, %v640_v20 }
  0x90   : > { %vm304_vm2 = vcmp.eq.s32.totalorder %v1652_v27, %v1731_v59  ;;  %1146 = vmatpush1.bf16.msra.mxu0 %v1145_v25  ;;  %v720_v48 = vmul.f32 %v1697_v46, %v645_v26  ;;  %vm306_vm3 = vcmp.eq.s32.totalorder %v1659_v30, %v1731_v59  ;;  %v797_v33 = vmul.f32 %v1704_v49, %v643_v10 }
  0x91   : > { %v624_v13 = vsel %vm569_vm12, %v511_v40, %v513_v24  ;;  %v379_v15 = vsel %vm304_vm2, %v1691_v44, 0.0  ;;  %v857_v12 = vadd.f32 %v793_v21, %v718_v11  ;;  %v622_v32 = vsel %vm569_vm12, %v513_v24, %v515_v34 }
  0x92   : > { %v642_v6 = vadd.f32 %v624_v13, %v374_v8  ;;  %v381_v20 = vsel %vm306_vm3, %v1691_v44, 0.0  ;;  %v859_v7 = vadd.f32 %v795_v16, %v720_v48  ;;  %v644_v29 = vadd.f32 %v622_v32, %v376_v9 }
  0x93   : > { %v454_v17 = vsel %vm304_vm2, %v1688_v43, 0.0  ;;  %v456_v22 = vsel %vm306_vm3, %v1688_v43, 0.0  ;;  %v799_v23 = vmul.f32 %v1704_v49, %v645_v26  ;;  %vm303_vm4 = vcmp.eq.s32.totalorder %v1652_v27, %v1743_v63 }
  0x94   : > { %v717_v40 = vmul.f32 %v1694_v45, %v642_v6  ;;  %v518_v4 = vrot.slane %v454_v17, 7  ;;  %v520_v55 = vrot.slane %v456_v22, 7  ;;  %v1147_v18 = vpack.c.bf16 %v859_v7, %v857_v12 }
  0x95   : > { %v719_v21 = vmul.f32 %v1694_v45, %v644_v29  ;;  %vm305_vm6 = vcmp.eq.s32.totalorder %v1659_v30, %v1743_v63  ;;  %v378_v24 = vsel %vm303_vm4, %v1682_v41, 0.0  ;;  %v453_v27 = vsel %vm303_vm4, %v1685_v42, 0.0 }
  0x96   : > { %v856_v16 = vadd.f32 %v792_v19, %v717_v40  ;;  %v619_v8 = vsel %vm569_vm12, %v518_v4, %v520_v55  ;;  %v621_v9 = vsel %vm569_vm12, %v516_v14, %v518_v4  ;;  %1148 = vmatprep.subr.bf16.mxu0 %v1147_v18  ;;  %v380_v26 = vsel %vm305_vm6, %v1682_v41, 0.0 }
  0x97   : > { %v858_v10 = vadd.f32 %v794_v5, %v719_v21  ;;  %v647_v25 = vadd.f32 %v621_v9, %v379_v15  ;;  %v649_v28 = vadd.f32 %v619_v8, %v381_v20  ;;  %v455_v19 = vsel %vm305_vm6, %v1685_v42, 0.0 }
  0x98   : > { %v796_v11 = vmul.f32 %v1700_v47, %v642_v6  ;;  %v517_v30 = vrot.slane %v453_v27, 7  ;;  %v519_v12 = vrot.slane %v455_v19, 7  ;;  %v798_v5 = vmul.f32 %v1700_v47, %v644_v29 }
  0x99   : > { %v1149_v48 = vpack.c.bf16 %v858_v10, %v856_v16  ;;  %v722_v14 = vmul.f32 %v1697_v46, %v647_v25  ;;  %v724_v13 = vmul.f32 %v1697_v46, %v649_v28  ;;  %vm308_vm7 = vcmp.eq.s32.totalorder %v1662_v31, %v1731_v59 }
  0x9a   : > { %vm310_vm8 = vcmp.eq.s32.totalorder %v1667_v35, %v1731_v59  ;;  %v620_v6 = vsel %vm569_vm12, %v515_v34, %v517_v30  ;;  %v383_v20 = vsel %vm308_vm7, %v1691_v44, 0.0  ;;  %v618_v7 = vsel %vm569_vm12, %v517_v30, %v519_v12 }
  0x9b   : > { %1150 = vmatpush1.bf16.msra.mxu0 %v1149_v48  ;;  %v861_v15 = vadd.f32 %v797_v33, %v722_v14  ;;  %v863_v32 = vadd.f32 %v799_v23, %v724_v13  ;;  %v646_v17 = vadd.f32 %v620_v6, %v378_v24  ;;  %v385_v29 = vsel %vm310_vm8, %v1691_v44, 0.0 }
  0x9c   : > { %v458_v22 = vsel %vm308_vm7, %v1688_v43, 0.0  ;;  %v648_v4 = vadd.f32 %v618_v7, %v380_v26  ;;  %v460_v18 = vsel %vm310_vm8, %v1688_v43, 0.0  ;;  %v801_v34 = vmul.f32 %v1704_v49, %v647_v25 }
  0x9d   : > { %v1151_v40 = vpack.c.bf16 %v863_v32, %v861_v15  ;;  %v522_v21 = vrot.slane %v458_v22, 7  ;;  %v721_v33 = vmul.f32 %v1694_v45, %v646_v17  ;;  %v524_v23 = vrot.slane %v460_v18, 7 }
  0x9e   : > { %v803_v16 = vmul.f32 %v1704_v49, %v649_v28  ;;  %v723_v8 = vmul.f32 %v1694_v45, %v648_v4  ;;  %vm307_vm9 = vcmp.eq.s32.totalorder %v1662_v31, %v1743_v63  ;;  %vm309_vm10 = vcmp.eq.s32.totalorder %v1667_v35, %v1743_v63 }
  0x9f   : > { %1152 = vmatprep.subr.bf16.mxu0 %v1151_v40  ;;  %v617_v9 = vsel %vm569_vm12, %v520_v55, %v522_v21  ;;  %v860_v10 = vadd.f32 %v796_v11, %v721_v33  ;;  %v615_v24 = vsel %vm569_vm12, %v522_v21, %v524_v23  ;;  %v382_v25 = vsel %vm307_vm9, %v1682_v41, 0.0 }
  0xa0   : > { %v651_v26 = vadd.f32 %v617_v9, %v383_v20  ;;  %v862_v28 = vadd.f32 %v798_v5, %v723_v8  ;;  %v653_v27 = vadd.f32 %v615_v24, %v385_v29  ;;  %v384_v19 = vsel %vm309_vm10, %v1682_v41, 0.0 }
  0xa1   : > { %v457_v48 = vsel %vm307_vm9, %v1685_v42, 0.0  ;;  %v459_v31 = vsel %vm309_vm10, %v1685_v42, 0.0  ;;  %v800_v35 = vmul.f32 %v1700_v47, %v646_v17  ;;  %v802_v15 = vmul.f32 %v1700_v47, %v648_v4 }
  0xa2   : > { %v726_v55 = vmul.f32 %v1697_v46, %v651_v26  ;;  %v521_v14 = vrot.slane %v457_v48, 7  ;;  %v1153_v11 = vpack.c.bf16 %v862_v28, %v860_v10  ;;  %v728_v13 = vmul.f32 %v1697_v46, %v653_v27 }
  0xa3   : > { %v523_v30 = vrot.slane %v459_v31, 7  ;;  %vm312_vm11 = vcmp.eq.s32.totalorder %v1670_v36, %v1731_v59  ;;  %vm314_vm13 = vcmp.eq.s32.totalorder %v1673_v37, %v1731_v59  ;;  %v807_v8 = vmul.f32 %v1704_v49, %v653_v27 }
  0xa4   : > { %v865_v32 = vadd.f32 %v801_v34, %v726_v55  ;;  %v616_v5 = vsel %vm569_vm12, %v519_v12, %v521_v14  ;;  %1154 = vmatpush1.bf16.msra.mxu0 %v1153_v11  ;;  %v867_v6 = vadd.f32 %v803_v16, %v728_v13  ;;  %v387_v17 = vsel %vm312_vm11, %v1691_v44, 0.0 }
  0xa5   : > { %v614_v20 = vsel %vm569_vm12, %v521_v14, %v523_v30  ;;  %v650_v7 = vadd.f32 %v616_v5, %v382_v25  ;;  %v389_v22 = vsel %vm314_vm13, %v1691_v44, 0.0  ;;  %v462_v40 = vsel %vm312_vm11, %v1688_v43, 0.0 }
  0xa6   : > { %v652_v29 = vadd.f32 %v614_v20, %v384_v19  ;;  %v464_v12 = vsel %vm314_vm13, %v1688_v43, 0.0  ;;  %v1155_v4 = vpack.c.bf16 %v867_v6, %v865_v32  ;;  %v526_v21 = vrot.slane %v462_v40, 7 }
  0xa7   : > { %v725_v18 = vmul.f32 %v1694_v45, %v650_v7  ;;  %v528_v33 = vrot.slane %v464_v12, 7  ;;  %v805_v16 = vmul.f32 %v1704_v49, %v651_v26  ;;  %vm311_vm14 = vcmp.eq.s32.totalorder %v1670_v36, %v1743_v63 }
  0xa8   : > { %v727_v34 = vmul.f32 %v1694_v45, %v652_v29  ;;  %1156 = vmatprep.subr.bf16.mxu0 %v1155_v4  ;;  %v613_v24 = vsel %vm569_vm12, %v524_v23, %v526_v21  ;;  %vm313_vm15 = vcmp.eq.s32.totalorder %v1673_v37, %v1743_v63  ;;  %v386_v26 = vsel %vm311_vm14, %v1682_v41, 0.0 }
  0xa9   : > { %v864_v9 = vadd.f32 %v800_v35, %v725_v18  ;;  %v611_v10 = vsel %vm569_vm12, %v526_v21, %v528_v33  ;;  %v655_v28 = vadd.f32 %v613_v24, %v387_v17  ;;  %v388_v27 = vsel %vm313_vm15, %v1682_v41, 0.0 }
  0xaa   : > { %v866_v25 = vadd.f32 %v802_v15, %v727_v34  ;;  %v657_v19 = vadd.f32 %v611_v10, %v389_v22  ;;  %v461_v36 = vsel %vm311_vm14, %v1685_v42, 0.0  ;;  %v463_v48 = vsel %vm313_vm15, %v1685_v42, 0.0 }
  0xab   : > { %v804_v55 = vmul.f32 %v1700_v47, %v650_v7  ;;  %v730_v14 = vmul.f32 %v1697_v46, %v655_v28  ;;  %v525_v35 = vrot.slane %v461_v36, 7  ;;  %v527_v37 = vrot.slane %v463_v48, 7 }
  0xac   : > { %v1157_v31 = vpack.c.bf16 %v866_v25, %v864_v9  ;;  %v732_v23 = vmul.f32 %v1697_v46, %v657_v19  ;;  %v806_v11 = vmul.f32 %v1700_v47, %v652_v29  ;;  %vm316_vm1 = vcmp.eq.s32.totalorder %v1676_v38, %v1731_v59 }
  0xad   : > { %vm318_vm2 = vcmp.eq.s32.totalorder %v1679_v39, %v1731_v59  ;;  %v869_v13 = vadd.f32 %v805_v16, %v730_v14  ;;  %v612_v32 = vsel %vm569_vm12, %v523_v30, %v525_v35  ;;  %v391_v5 = vsel %vm316_vm1, %v1691_v44, 0.0 }
  0xae   : > { %1158 = vmatpush1.bf16.msra.mxu0 %v1157_v31  ;;  %v871_v15 = vadd.f32 %v807_v8, %v732_v23  ;;  %v610_v6 = vsel %vm569_vm12, %v525_v35, %v527_v37  ;;  %v654_v20 = vadd.f32 %v612_v32, %v386_v26  ;;  %v393_v7 = vsel %vm318_vm2, %v1691_v44, 0.0 }
  0xaf   : > { %v466_v17 = vsel %vm316_vm1, %v1688_v43, 0.0  ;;  %v656_v22 = vadd.f32 %v610_v6, %v388_v27  ;;  %v468_v40 = vsel %vm318_vm2, %v1688_v43, 0.0  ;;  %v809_v30 = vmul.f32 %v1704_v49, %v655_v28 }
  0xb0   : > { %v1159_v29 = vpack.c.bf16 %v871_v15, %v869_v13  ;;  %v530_v12 = vrot.slane %v466_v17, 7  ;;  %v729_v4 = vmul.f32 %v1694_v45, %v654_v20  ;;  %v532_v18 = vrot.slane %v468_v40, 7 }
  0xb1   : > { %v811_v21 = vmul.f32 %v1704_v49, %v657_v19  ;;  %v731_v34 = vmul.f32 %v1694_v45, %v656_v22  ;;  %vm315_vm3 = vcmp.eq.s32.totalorder %v1676_v38, %v1743_v63  ;;  %vm317_vm4 = vcmp.eq.s32.totalorder %v1679_v39, %v1743_v63 }
  0xb2   : > { %1160 = vmatprep.subr.bf16.mxu0 %v1159_v29  ;;  %v609_v16 = vsel %vm569_vm12, %v528_v33, %v530_v12  ;;  %v868_v8 = vadd.f32 %v804_v55, %v729_v4  ;;  %v607_v9 = vsel %vm569_vm12, %v530_v12, %v532_v18  ;;  %v390_v24 = vsel %vm315_vm3, %v1682_v41, 0.0 }
  0xb3   : > { %v659_v10 = vadd.f32 %v609_v16, %v391_v5  ;;  %v870_v25 = vadd.f32 %v806_v11, %v731_v34  ;;  %v661_v28 = vadd.f32 %v607_v9, %v393_v7  ;;  %v392_v19 = vsel %vm317_vm4, %v1682_v41, 0.0 }
  0xb4   : > { %v465_v26 = vsel %vm315_vm3, %v1685_v42, 0.0  ;;  %v467_v38 = vsel %vm317_vm4, %v1685_v42, 0.0  ;;  %v808_v39 = vmul.f32 %v1700_v47, %v654_v20  ;;  %v810_v31 = vmul.f32 %v1700_v47, %v656_v22 }
  0xb5   : > { %v734_v33 = vmul.f32 %v1697_v46, %v659_v10  ;;  %v529_v27 = vrot.slane %v465_v26, 7  ;;  %v1161_v36 = vpack.c.bf16 %v870_v25, %v868_v8  ;;  %v736_v48 = vmul.f32 %v1697_v46, %v661_v28 }
  0xb6   : > { %v531_v55 = vrot.slane %v467_v38, 7  ;;  %vm320_vm6 = vcmp.eq.s32.totalorder %v1707_v50, %v1731_v59  ;;  %vm322_vm7 = vcmp.eq.s32.totalorder %v1710_v51, %v1731_v59  ;;  %v813_v40 = vmul.f32 %v1704_v49, %v659_v10 }
  0xb7   : > { %v873_v14 = vadd.f32 %v809_v30, %v734_v33  ;;  %v608_v23 = vsel %vm569_vm12, %v527_v37, %v529_v27  ;;  %1162 = vmatpush1.bf16.msra.mxu0 %v1161_v36  ;;  %v875_v35 = vadd.f32 %v811_v21, %v736_v48  ;;  %v395_v15 = vsel %vm320_vm6, %v1691_v44, 0.0 }
  0xb8   : > { %v606_v11 = vsel %vm569_vm12, %v529_v27, %v531_v55  ;;  %v658_v13 = vadd.f32 %v608_v23, %v390_v24  ;;  %v397_v5 = vsel %vm322_vm7, %v1691_v44, 0.0  ;;  %v470_v6 = vsel %vm320_vm6, %v1688_v43, 0.0 }
  0xb9   : > { %v660_v32 = vadd.f32 %v606_v11, %v392_v19  ;;  %v472_v37 = vsel %vm322_vm7, %v1688_v43, 0.0  ;;  %v1163_v20 = vpack.c.bf16 %v875_v35, %v873_v14  ;;  %v534_v17 = vrot.slane %v470_v6, 7 }
  0xba   : > { %v733_v7 = vmul.f32 %v1694_v45, %v658_v13  ;;  %v536_v29 = vrot.slane %v472_v37, 7  ;;  %v815_v12 = vmul.f32 %v1704_v49, %v661_v28  ;;  %vm319_vm8 = vcmp.eq.s32.totalorder %v1707_v50, %v1743_v63 }
  0xbb   : > { %v735_v22 = vmul.f32 %v1694_v45, %v660_v32  ;;  %1164 = vmatprep.subr.bf16.mxu0 %v1163_v20  ;;  %v605_v21 = vsel %vm569_vm12, %v532_v18, %v534_v17  ;;  %vm321_vm9 = vcmp.eq.s32.totalorder %v1710_v51, %v1743_v63  ;;  %v394_v9 = vsel %vm319_vm8, %v1682_v41, 0.0 }
  0xbc   : > { %v872_v4 = vadd.f32 %v808_v39, %v733_v7  ;;  %v603_v30 = vsel %vm569_vm12, %v534_v17, %v536_v29  ;;  %v663_v16 = vadd.f32 %v605_v21, %v395_v15  ;;  %v396_v10 = vsel %vm321_vm9, %v1682_v41, 0.0 }
  0xbd   : > { %v874_v34 = vadd.f32 %v810_v31, %v735_v22  ;;  %v665_v8 = vadd.f32 %v603_v30, %v397_v5  ;;  %v469_v50 = vsel %vm319_vm8, %v1685_v42, 0.0  ;;  %v471_v24 = vsel %vm321_vm9, %v1685_v42, 0.0 }
  0xbe   : > { %v812_v25 = vmul.f32 %v1700_v47, %v658_v13  ;;  %v738_v19 = vmul.f32 %v1697_v46, %v663_v16  ;;  %v533_v26 = vrot.slane %v469_v50, 7  ;;  %v535_v51 = vrot.slane %v471_v24, 7 }
  0xbf   : > { %v1165_v28 = vpack.c.bf16 %v874_v34, %v872_v4  ;;  %v740_v18 = vmul.f32 %v1697_v46, %v665_v8  ;;  %v814_v33 = vmul.f32 %v1700_v47, %v660_v32  ;;  %vm324_vm10 = vcmp.eq.s32.totalorder %v1713_v52, %v1731_v59 }
  0xc0   : > { %vm326_vm11 = vcmp.eq.s32.totalorder %v1716_v53, %v1731_v59  ;;  %v877_v38 = vadd.f32 %v813_v40, %v738_v19  ;;  %v604_v39 = vsel %vm569_vm12, %v531_v55, %v533_v26  ;;  %v399_v36 = vsel %vm324_vm10, %v1691_v44, 0.0 }
  0xc1   : > { %1166 = vmatpush1.bf16.msra.mxu0 %v1165_v28  ;;  %v879_v27 = vadd.f32 %v815_v12, %v740_v18  ;;  %v602_v48 = vsel %vm569_vm12, %v533_v26, %v535_v51  ;;  %v662_v31 = vadd.f32 %v604_v39, %v394_v9  ;;  %v401_v14 = vsel %vm326_vm11, %v1691_v44, 0.0 }
  0xc2   : > { %v474_v23 = vsel %vm324_vm10, %v1688_v43, 0.0  ;;  %v664_v11 = vadd.f32 %v602_v48, %v396_v10  ;;  %v476_v13 = vsel %vm326_vm11, %v1688_v43, 0.0  ;;  %v817_v55 = vmul.f32 %v1704_v49, %v663_v16 }
  0xc3   : > { %v1167_v35 = vpack.c.bf16 %v879_v27, %v877_v38  ;;  %v538_v15 = vrot.slane %v474_v23, 7  ;;  %v737_v32 = vmul.f32 %v1694_v45, %v662_v31  ;;  %v540_v5 = vrot.slane %v476_v13, 7 }
  0xc4   : > { %v819_v6 = vmul.f32 %v1704_v49, %v665_v8  ;;  %v739_v37 = vmul.f32 %v1694_v45, %v664_v11  ;;  %vm323_vm13 = vcmp.eq.s32.totalorder %v1713_v52, %v1743_v63  ;;  %vm325_vm14 = vcmp.eq.s32.totalorder %v1716_v53, %v1743_v63 }
  0xc5   : > { %1168 = vmatprep.subr.bf16.mxu0 %v1167_v35  ;;  %v601_v20 = vsel %vm569_vm12, %v536_v29, %v538_v15  ;;  %v876_v7 = vadd.f32 %v812_v25, %v737_v32  ;;  %v599_v17 = vsel %vm569_vm12, %v538_v15, %v540_v5  ;;  %v398_v40 = vsel %vm323_vm13, %v1682_v41, 0.0 }
  0xc6   : > { %v667_v22 = vadd.f32 %v601_v20, %v399_v36  ;;  %v878_v12 = vadd.f32 %v814_v33, %v739_v37  ;;  %v669_v4 = vadd.f32 %v599_v17, %v401_v14  ;;  %v400_v30 = vsel %vm325_vm14, %v1682_v41, 0.0 }
  0xc7   : > { %v473_v21 = vsel %vm323_vm13, %v1685_v42, 0.0  ;;  %v475_v52 = vsel %vm325_vm14, %v1685_v42, 0.0  ;;  %v816_v53 = vmul.f32 %v1700_v47, %v662_v31  ;;  %v818_v10 = vmul.f32 %v1700_v47, %v664_v11 }
  0xc8   : > { %v742_v29 = vmul.f32 %v1697_v46, %v667_v22  ;;  %v537_v34 = vrot.slane %v473_v21, 7  ;;  %v1169_v16 = vpack.c.bf16 %v878_v12, %v876_v7  ;;  %v744_v8 = vmul.f32 %v1697_v46, %v669_v4 }
  0xc9   : > { %v539_v9 = vrot.slane %v475_v52, 7  ;;  %vm328_vm15 = vcmp.eq.s32.totalorder %v1719_v54, %v1731_v59  ;;  %vm330_vm1 = vcmp.eq.s32.totalorder %v1722_v56, %v1731_v59  ;;  %v821_v14 = vmul.f32 %v1704_v49, %v667_v22 }
  0xca   : > { %v881_v50 = vadd.f32 %v817_v55, %v742_v29  ;;  %v600_v24 = vsel %vm569_vm12, %v535_v51, %v537_v34  ;;  %1170 = vmatpush1.bf16.msra.mxu0 %v1169_v16  ;;  %v883_v25 = vadd.f32 %v819_v6, %v744_v8  ;;  %v403_v18 = vsel %vm328_vm15, %v1691_v44, 0.0 }
  0xcb   : > { %v598_v28 = vsel %vm569_vm12, %v537_v34, %v539_v9  ;;  %v666_v19 = vadd.f32 %v600_v24, %v398_v40  ;;  %v405_v33 = vsel %vm330_vm1, %v1691_v44, 0.0  ;;  %v478_v38 = vsel %vm328_vm15, %v1688_v43, 0.0 }
  0xcc   : > { %v668_v26 = vadd.f32 %v598_v28, %v400_v30  ;;  %v480_v51 = vsel %vm330_vm1, %v1688_v43, 0.0  ;;  %v1171_v27 = vpack.c.bf16 %v883_v25, %v881_v50  ;;  %v542_v36 = vrot.slane %v478_v38, 7 }
  0xcd   : > { %v741_v39 = vmul.f32 %v1694_v45, %v666_v19  ;;  %v544_v48 = vrot.slane %v480_v51, 7  ;;  %v823_v23 = vmul.f32 %v1704_v49, %v669_v4  ;;  %vm327_vm2 = vcmp.eq.s32.totalorder %v1719_v54, %v1743_v63 }
  0xce   : > { %v743_v31 = vmul.f32 %v1694_v45, %v668_v26  ;;  %1172 = vmatprep.subr.bf16.mxu0 %v1171_v27  ;;  %v597_v13 = vsel %vm569_vm12, %v540_v5, %v542_v36  ;;  %vm329_vm3 = vcmp.eq.s32.totalorder %v1722_v56, %v1743_v63  ;;  %v402_v6 = vsel %vm327_vm2, %v1682_v41, 0.0 }
  0xcf   : > { %v880_v35 = vadd.f32 %v816_v53, %v741_v39  ;;  %v595_v11 = vsel %vm569_vm12, %v542_v36, %v544_v48  ;;  %v671_v32 = vadd.f32 %v597_v13, %v403_v18  ;;  %v404_v37 = vsel %vm329_vm3, %v1682_v41, 0.0 }
  0xd0   : > { %v882_v15 = vadd.f32 %v818_v10, %v743_v31  ;;  %v673_v55 = vadd.f32 %v595_v11, %v405_v33  ;;  %v477_v54 = vsel %vm327_vm2, %v1685_v42, 0.0  ;;  %v479_v20 = vsel %vm329_vm3, %v1685_v42, 0.0 }
  0xd1   : > { %v820_v7 = vmul.f32 %v1700_v47, %v666_v19  ;;  %v746_v22 = vmul.f32 %v1697_v46, %v671_v32  ;;  %v541_v40 = vrot.slane %v477_v54, 7  ;;  %v543_v56 = vrot.slane %v479_v20, 7 }
  0xd2   : > { %v1173_v17 = vpack.c.bf16 %v882_v15, %v880_v35  ;;  %v748_v5 = vmul.f32 %v1697_v46, %v673_v55  ;;  %v822_v12 = vmul.f32 %v1700_v47, %v668_v26  ;;  %vm332_vm4 = vcmp.eq.s32.totalorder %v1725_v57, %v1731_v59 }
  0xd3   : > { %vm334_vm6 = vcmp.eq.s32.totalorder %v1728_v58, %v1731_v59  ;;  %v885_v4 = vadd.f32 %v821_v14, %v746_v22  ;;  %v596_v21 = vsel %vm569_vm12, %v539_v9, %v541_v40  ;;  %v407_v29 = vsel %vm332_vm4, %v1691_v44, 0.0 }
  0xd4   : > { %1174 = vmatpush1.bf16.msra.mxu0 %v1173_v17  ;;  %v887_v30 = vadd.f32 %v823_v23, %v748_v5  ;;  %v594_v52 = vsel %vm569_vm12, %v541_v40, %v543_v56  ;;  %v670_v34 = vadd.f32 %v596_v21, %v402_v6  ;;  %v409_v53 = vsel %vm334_vm6, %v1691_v44, 0.0 }
  0xd5   : > { %v482_v16 = vsel %vm332_vm4, %v1688_v43, 0.0  ;;  %v672_v10 = vadd.f32 %v594_v52, %v404_v37  ;;  %v484_v50 = vsel %vm334_vm6, %v1688_v43, 0.0  ;;  %v825_v9 = vmul.f32 %v1704_v49, %v671_v32 }
  0xd6   : > { %v1175_v8 = vpack.c.bf16 %v887_v30, %v885_v4  ;;  %v546_v24 = vrot.slane %v482_v16, 7  ;;  %v745_v25 = vmul.f32 %v1694_v45, %v670_v34  ;;  %v548_v28 = vrot.slane %v484_v50, 7 }
  0xd7   : > { %v827_v19 = vmul.f32 %v1704_v49, %v673_v55  ;;  %v747_v18 = vmul.f32 %v1694_v45, %v672_v10  ;;  %vm331_vm7 = vcmp.eq.s32.totalorder %v1725_v57, %v1743_v63  ;;  %vm333_vm8 = vcmp.eq.s32.totalorder %v1728_v58, %v1743_v63 }
  0xd8   : > { %1176 = vmatprep.subr.bf16.mxu0 %v1175_v8  ;;  %v593_v26 = vsel %vm569_vm12, %v544_v48, %v546_v24  ;;  %v884_v33 = vadd.f32 %v820_v7, %v745_v25  ;;  %v591_v38 = vsel %vm569_vm12, %v546_v24, %v548_v28  ;;  %v406_v27 = vsel %vm331_vm7, %v1682_v41, 0.0 }
  0xd9   : > { %v675_v51 = vadd.f32 %v593_v26, %v407_v29  ;;  %v886_v39 = vadd.f32 %v822_v12, %v747_v18  ;;  %v677_v36 = vadd.f32 %v591_v38, %v409_v53  ;;  %v408_v31 = vsel %vm333_vm8, %v1682_v41, 0.0 }
  0xda   : > { %v481_v14 = vsel %vm331_vm7, %v1685_v42, 0.0  ;;  %v483_v57 = vsel %vm333_vm8, %v1685_v42, 0.0  ;;  %v824_v58 = vmul.f32 %v1700_v47, %v670_v34  ;;  %v826_v15 = vmul.f32 %v1700_v47, %v672_v10 }
  0xdb   : > { %v750_v48 = vmul.f32 %v1697_v46, %v675_v51  ;;  %v545_v23 = vrot.slane %v481_v14, 7  ;;  %v1177_v35 = vpack.c.bf16 %v886_v39, %v884_v33  ;;  %v752_v11 = vmul.f32 %v1697_v46, %v677_v36 }
  0xdc   : > { %v547_v13 = vrot.slane %v483_v57, 7  ;;  %vm336_vm9 = vcmp.eq.s32.totalorder %v1734_v60, %v1731_v59  ;;  %vm338_vm10 = vcmp.eq.s32.totalorder %v1737_v61, %v1731_v59  ;;  %v829_v21 = vmul.f32 %v1704_v49, %v675_v51 }
  0xdd   : > { %v889_v32 = vadd.f32 %v825_v9, %v750_v48  ;;  %v592_v55 = vsel %vm569_vm12, %v543_v56, %v545_v23  ;;  %1178 = vmatpush1.bf16.msra.mxu0 %v1177_v35  ;;  %v891_v6 = vadd.f32 %v827_v19, %v752_v11  ;;  %v411_v20 = vsel %vm336_vm9, %v1691_v44, 0.0 }
  0xde   : > { %v590_v37 = vsel %vm569_vm12, %v545_v23, %v547_v13  ;;  %v674_v54 = vadd.f32 %v592_v55, %v406_v27  ;;  %v413_v17 = vsel %vm338_vm10, %v1691_v44, 0.0  ;;  %v486_v22 = vsel %vm336_vm9, %v1688_v43, 0.0 }
  0xdf   : > { %v676_v7 = vadd.f32 %v590_v37, %v408_v31  ;;  %v488_v5 = vsel %vm338_vm10, %v1688_v43, 0.0  ;;  %v1179_v40 = vpack.c.bf16 %v891_v6, %v889_v32  ;;  %v550_v12 = vrot.slane %v486_v22, 7 }
  0xe0   : > { %v749_v56 = vmul.f32 %v1694_v45, %v674_v54  ;;  %v552_v4 = vrot.slane %v488_v5, 7  ;;  %v831_v29 = vmul.f32 %v1704_v49, %v677_v36  ;;  %vm335_vm11 = vcmp.eq.s32.totalorder %v1734_v60, %v1743_v63 }
  0xe1   : > { %v751_v30 = vmul.f32 %v1694_v45, %v676_v7  ;;  %1180 = vmatprep.subr.bf16.mxu0 %v1179_v40  ;;  %v589_v53 = vsel %vm569_vm12, %v548_v28, %v550_v12  ;;  %vm337_vm13 = vcmp.eq.s32.totalorder %v1737_v61, %v1743_v63  ;;  %v410_v50 = vsel %vm335_vm11, %v1682_v41, 0.0 }
  0xe2   : > { %v888_v52 = vadd.f32 %v824_v58, %v749_v56  ;;  %v587_v34 = vsel %vm569_vm12, %v550_v12, %v552_v4  ;;  %v679_v8 = vadd.f32 %v589_v53, %v411_v20  ;;  %v412_v24 = vsel %vm337_vm13, %v1682_v41, 0.0 }
  0xe3   : > { %v890_v16 = vadd.f32 %v826_v15, %v751_v30  ;;  %v681_v10 = vadd.f32 %v587_v34, %v413_v17  ;;  %v485_v60 = vsel %vm335_vm11, %v1685_v42, 0.0  ;;  %v487_v25 = vsel %vm337_vm13, %v1685_v42, 0.0 }
  0xe4   : > { %v828_v9 = vmul.f32 %v1700_v47, %v674_v54  ;;  %v754_v18 = vmul.f32 %v1697_v46, %v679_v8  ;;  %v549_v26 = vrot.slane %v485_v60, 7  ;;  %v551_v61 = vrot.slane %v487_v25, 7 }
  0xe5   : > { %v1181_v19 = vpack.c.bf16 %v890_v16, %v888_v52  ;;  %v756_v28 = vmul.f32 %v1697_v46, %v681_v10  ;;  %v830_v33 = vmul.f32 %v1700_v47, %v676_v7  ;;  %vm340_vm14 = vcmp.eq.s32.totalorder %v1740_v62, %v1731_v59 }
  0xe6   : > { %vm342_vm15 = vcmp.eq.s32.totalorder %v1746_v0, %v1731_v59  ;;  %v893_v38 = vadd.f32 %v829_v21, %v754_v18  ;;  %v588_v27 = vsel %vm569_vm12, %v547_v13, %v549_v26  ;;  %v415_v39 = vsel %vm340_vm14, %v1691_v44, 0.0 }
  0xe7   : > { %1182 = vmatpush1.bf16.msra.mxu0 %v1181_v19  ;;  %v895_v51 = vadd.f32 %v831_v29, %v756_v28  ;;  %v586_v36 = vsel %vm569_vm12, %v549_v26, %v551_v61  ;;  %v678_v31 = vadd.f32 %v588_v27, %v410_v50  ;;  %v417_v14 = vsel %vm342_vm15, %v1691_v44, 0.0 }
  0xe8   : > { %v490_v48 = vsel %vm340_vm14, %v1688_v43, 0.0  ;;  %v680_v23 = vadd.f32 %v586_v36, %v412_v24  ;;  %v492_v58 = vsel %vm342_vm15, %v1688_v43, 0.0  ;;  %v833_v13 = vmul.f32 %v1704_v49, %v679_v8 }
  0xe9   : > { %v1183_v57 = vpack.c.bf16 %v895_v51, %v893_v38  ;;  %v554_v35 = vrot.slane %v490_v48, 7  ;;  %v753_v11 = vmul.f32 %v1694_v45, %v678_v31  ;;  %v556_v15 = vrot.slane %v492_v58, 7 }
  0xea   : > { %v835_v32 = vmul.f32 %v1704_v49, %v681_v10  ;;  %v755_v55 = vmul.f32 %v1694_v45, %v680_v23  ;;  %vm339_vm1 = vcmp.eq.s32.totalorder %v1740_v62, %v1743_v63  ;;  %vm341_vm2 = vcmp.eq.s32.totalorder %v1746_v0, %v1743_v63 }
  0xeb   : > { %1184 = vmatprep.subr.bf16.mxu0 %v1183_v57  ;;  %v585_v6 = vsel %vm569_vm12, %v552_v4, %v554_v35  ;;  %v892_v37 = vadd.f32 %v828_v9, %v753_v11  ;;  %v583_v54 = vsel %vm569_vm12, %v554_v35, %v556_v15  ;;  %v414_v7 = vsel %vm339_vm1, %v1682_v41, 0.0 }
  0xec   : > { %v683_v20 = vadd.f32 %v585_v6, %v415_v39  ;;  %v894_v17 = vadd.f32 %v830_v33, %v755_v55  ;;  %v685_v22 = vadd.f32 %v583_v54, %v417_v14  ;;  %v416_v5 = vsel %vm341_vm2, %v1682_v41, 0.0 }
  0xed   : > { %v489_v40 = vsel %vm339_vm1, %v1685_v42, 0.0  ;;  %v491_v62 = vsel %vm341_vm2, %v1685_v42, 0.0  ;;  %v832_v0 = vmul.f32 %v1700_v47, %v678_v31  ;;  %v834_v29 = vmul.f32 %v1700_v47, %v680_v23 }
  0xee   : > { %v758_v56 = vmul.f32 %v1697_v46, %v683_v20  ;;  %v553_v12 = vrot.slane %v489_v40, 7  ;;  %v1185_v4 = vpack.c.bf16 %v894_v17, %v892_v37  ;;  %v760_v30 = vmul.f32 %v1697_v46, %v685_v22 }
  0xef   : > { %v555_v21 = vrot.slane %v491_v62, 7  ;;  %vm344_vm3 = vcmp.eq.s32.totalorder %v1749_v2, %v1731_v59  ;;  %vm346_vm4 = vcmp.eq.s32.totalorder %v1752_v3, %v1731_v59  ;;  %v839_v33 = vmul.f32 %v1704_v49, %v685_v22 }
  0xf0   : > { %v897_v52 = vadd.f32 %v833_v13, %v758_v56  ;;  %v584_v34 = vsel %vm569_vm12, %v551_v61, %v553_v12  ;;  %1186 = vmatpush1.bf16.msra.mxu0 %v1185_v4  ;;  %v899_v53 = vadd.f32 %v835_v32, %v760_v30  ;;  %v419_v10 = vsel %vm344_vm3, %v1691_v44, 0.0 }
  0xf1   : > { %v582_v16 = vsel %vm569_vm12, %v553_v12, %v555_v21  ;;  %v682_v8 = vadd.f32 %v584_v34, %v414_v7  ;;  %v421_v24 = vsel %vm346_vm4, %v1691_v44, 0.0  ;;  %v494_v60 = vsel %vm344_vm3, %v1688_v43, 0.0 }
  0xf2   : > { %v684_v50 = vadd.f32 %v582_v16, %v416_v5  ;;  %v496_v25 = vsel %vm346_vm4, %v1688_v43, 0.0  ;;  %v1187_v9 = vpack.c.bf16 %v899_v53, %v897_v52  ;;  %v558_v18 = vrot.slane %v494_v60, 7  ;;  %v2429_v52 = vld [vmem:[#allocation12_spill] sm:$0xff] }
  0xf3   : > { %v757_v19 = vmul.f32 %v1694_v45, %v682_v8  ;;  %v560_v28 = vrot.slane %v496_v25, 7  ;;  %v837_v61 = vmul.f32 %v1704_v49, %v683_v20  ;;  %vm343_vm6 = vcmp.eq.s32.totalorder %v1749_v2, %v1743_v63 }
  0xf4   : > { %v759_v26 = vmul.f32 %v1694_v45, %v684_v50  ;;  %1188 = vmatprep.subr.bf16.mxu0 %v1187_v9  ;;  %v581_v27 = vsel %vm569_vm12, %v556_v15, %v558_v18  ;;  %vm345_vm7 = vcmp.eq.s32.totalorder %v1752_v3, %v1743_v63  ;;  %v418_v14 = vsel %vm343_vm6, %v1682_v41, 0.0  ;;  %v2433_v9 = vld [vmem:[#allocation13_spill] sm:$0xff] }
  0xf5   : > { %v896_v38 = vadd.f32 %v832_v0, %v757_v19  ;;  %v579_v51 = vsel %vm569_vm12, %v558_v18, %v560_v28  ;;  %v687_v36 = vadd.f32 %v581_v27, %v419_v10  ;;  %v420_v48 = vsel %vm345_vm7, %v1682_v41, 0.0  ;;  %v2434_v18 = vld [vmem:[#allocation14_spill] sm:$0xff] }
  0xf6   : > { %v898_v39 = vadd.f32 %v834_v29, %v759_v26  ;;  %v689_v31 = vadd.f32 %v579_v51, %v421_v24  ;;  %v493_v2 = vsel %vm343_vm6, %v1685_v42, 0.0  ;;  %v495_v57 = vsel %vm345_vm7, %v1685_v42, 0.0  ;;  %v2431_v24 = vld [vmem:[#allocation15_spill] sm:$0xff] }
  0xf7   : > { %v836_v23 = vmul.f32 %v1700_v47, %v682_v8  ;;  %v762_v35 = vmul.f32 %v1697_v46, %v687_v36  ;;  %v557_v15 = vrot.slane %v493_v2, 7  ;;  %v559_v3 = vrot.slane %v495_v57, 7  ;;  %v2436_v57 = vld [vmem:[#allocation17_spill] sm:$0xff] }
  0xf8   : > { %v1189_v58 = vpack.c.bf16 %v898_v39, %v896_v38  ;;  %v764_v11 = vmul.f32 %v1697_v46, %v689_v31  ;;  %v838_v13 = vmul.f32 %v1700_v47, %v684_v50  ;;  %v279_v32 = vadd.s32 224, %v1607_v1 }
  0xf9   : > { %v425_v6 = vsel %vm350_vm0, %v1691_v44, 0.0  ;;  %v901_v37 = vadd.f32 %v837_v61, %v762_v35  ;;  %v580_v20 = vsel %vm569_vm12, %v555_v21, %v557_v15  ;;  %v841_v7 = vmul.f32 %v1704_v49, %v687_v36  ;;  %v2435_v36 = vld [vmem:[#allocation16_spill] sm:$0xff] }
  0xfa   : > { %1190 = vmatpush1.bf16.msra.mxu0 %v1189_v58  ;;  %v903_v54 = vadd.f32 %v839_v33, %v764_v11  ;;  %v578_v17 = vsel %vm569_vm12, %v557_v15, %v559_v3  ;;  %v686_v22 = vadd.f32 %v580_v20, %v418_v14  ;;  %vm348_vm8 = vcmp.eq.s32.totalorder %v279_v32, %v1731_v59 }
  0xfb   : > { %v843_v5 = vmul.f32 %v1704_v49, %v689_v31  ;;  %v688_v56 = vadd.f32 %v578_v17, %v420_v48  ;;  %v423_v62 = vsel %vm348_vm8, %v1691_v44, 0.0  ;;  %v498_v12 = vsel %vm348_vm8, %v1688_v43, 0.0  ;;  %v912_v31 = vld [vmem:[%s1601_s16] sm:$0xff] }
  0xfc   : > { %v1191_v40 = vpack.c.bf16 %v903_v54, %v901_v37  ;;  %v761_v0 = vmul.f32 %v1694_v45, %v686_v22  ;;  %v562_v4 = vrot.slane %v498_v12, 7  ;;  %vm347_vm0 = vcmp.eq.s32.totalorder %v279_v32, %v1743_v63 }
  0xfd   : > { %v424_v30 = vsel %vm349_vm5, %v1682_v41, 0.0  ;;  %v763_v59 = vmul.f32 %v1694_v45, %v688_v56  ;;  %v422_v21 = vsel %vm347_vm0, %v1682_v41, 0.0  ;;  %v497_v29 = vsel %vm347_vm0, %v1685_v42, 0.0 }
  0xfe   : > { %1192 = vmatprep.subr.bf16.mxu0 %v1191_v40  ;;  %v840_v44 = vmul.f32 %v1700_v47, %v686_v22  ;;  %v900_v43 = vadd.f32 %v836_v23, %v761_v0  ;;  %v2430_v34 = vrot.slane %v2429_v52, 7  ;;  %v577_v16 = vsel %vm569_vm12, %v560_v28, %v562_v4 }
  0xff   : > { %v561_v63 = vrot.slane %v497_v29, 7  ;;  %v902_v8 = vadd.f32 %v838_v13, %v763_v59  ;;  %v691_v10 = vadd.f32 %v577_v16, %v423_v62  ;;  %v842_v41 = vmul.f32 %v1700_v47, %v688_v56 }
 0x100   : > { %v575_v53 = vsel %vm569_vm12, %v562_v4, %v2430_v34  ;;  %v2432_v42 = vrot.slane %v2431_v24, 7  ;;  %v770_v19 = vmul.f32 %v1697_v46, %v2433_v9  ;;  %v772_v28 = vmul.f32 %v1697_v46, %v2434_v18 }
 0x101   : > { %v693_v50 = vadd.f32 %v575_v53, %v425_v6  ;;  %v576_v25 = vsel %vm569_vm12, %v559_v3, %v561_v63  ;;  %v1193_v26 = vpack.c.bf16 %v902_v8, %v900_v43  ;;  %v766_v61 = vmul.f32 %v1697_v46, %v691_v10 }
 0x102   : > { %v574_v60 = vsel %vm569_vm12, %v561_v63, %v2432_v42  ;;  %v690_v38 = vadd.f32 %v576_v25, %v422_v21  ;;  %v845_v27 = vmul.f32 %v1704_v49, %v691_v10  ;;  %v769_v1 = vmul.f32 %v1694_v45, %v2435_v36 }
 0x103   : > { %v768_v33 = vmul.f32 %v1697_v46, %v693_v50  ;;  %v692_v51 = vadd.f32 %v574_v60, %v424_v30  ;;  %v847_v39 = vmul.f32 %v1704_v49, %v693_v50  ;;  %1194 = vmatpush1.bf16.msra.mxu0 %v1193_v26  ;;  %v905_v14 = vadd.f32 %v841_v7, %v766_v61 }
 0x104   : > { %v765_v2 = vmul.f32 %v1694_v45, %v690_v38  ;;  %v771_v23 = vmul.f32 %v1694_v45, %v2436_v57  ;;  %v909_v58 = vadd.f32 %v845_v27, %v770_v19  ;;  %v844_v11 = vmul.f32 %v1700_v47, %v690_v38 }
 0x105   : > { %v907_v48 = vadd.f32 %v843_v5, %v768_v33  ;;  %v767_v46 = vmul.f32 %v1694_v45, %v692_v51  ;;  %v911_v35 = vadd.f32 %v847_v39, %v772_v28  ;;  %v846_v3 = vmul.f32 %v1700_v47, %v692_v51 }
 0x106   : > { %v904_v49 = vadd.f32 %v840_v44, %v765_v2  ;;  %v914_v13 = vcombine.high %v912_v31, %v912_v31  ;;  %v908_v55 = vadd.f32 %v844_v11, %v769_v1 }
 0x107   : > { %v1195_v15 = vpack.c.bf16 %v907_v48, %v905_v14  ;;  %v906_v32 = vadd.f32 %v842_v41, %v767_v46  ;;  %v1199_v6 = vpack.c.bf16 %v911_v35, %v909_v58  ;;  %v910_v37 = vadd.f32 %v846_v3, %v771_v23 }
 0x108   : > { %980 = vmatprep.mubr.f32.mxu0 %v914_v13 }
 0x109   : > { %1196 = vmatprep.subr.bf16.mxu0 %v1195_v15  ;;  %v1197_v54 = vpack.c.bf16 %v906_v32, %v904_v49  ;;  %v1201_v45 = vpack.c.bf16 %v910_v37, %v908_v55 }
 0x10b   : > { %1198 = vmatpush1.bf16.msra.mxu0 %v1197_v54 }
 0x10c   : > { %1200 = vmatprep.subr.bf16.mxu0 %v1199_v6 }
 0x10f   : > { %1202 = vmatpush1.bf16.msra.mxu0 %v1201_v45 }
 0x112   : > { %981 = vmatmul.mubr.f32.vlgmr.msra.gmra.mrb[0].mxu0 %v912_v31 }
 0x1e5   : > { %v982_v47 = vpop.f32.mrb[0].mxu0 }
 0x1e6   : > { %v984_v20 = vpop.f32.mrb[1].mxu0 }
 0x1e7   : > { %v989_v7 = vcombine.low %v982_v47, %v984_v20 }
 0x1e9   : > { %991 = vst [vmem:[%s215_s19] sm:$0xff] %v989_v7 }
 0x1ea   : > { %1348 = shalt.err (!%p1345_p2)
}
 0x1eb   : > { %s1349_s8 = scalar_lea.hbm %s2339_s27, 128  ;;  %s1353_s4 = scalar_lea.hbm %s2390_s2, 256 }
 0x1ec   : > { %p1350_p9 = scmp.ne.s32.totalorder %s2339_s27, %s1349_s8  ;;  %p1354_p6 = scmp.lt.u32.totalorder %s2339_s27, %s2390_s2 }
 0x1ed   : > { %p1355_p13 = scmp.lt.u32.totalorder %s1353_s4, %s1349_s8  ;;  %p1357_p8 = scmp.lt.u32.totalorder %s1349_s8, %s2339_s27 }
 0x1ee   : > { %p1351_p11 = pnand %p1350_p9, %p2437_p0 }
 0x1ef   : > { %p1356_p5 = por %p1355_p13, %p1354_p6 }
 0x1f0   : > { %p1352_p3 = pneg %p1351_p11 }
 0x1f1   : > { %p1358_p7 = por %p1357_p8, %p1356_p5 }
 0x1f3   : > { %p1359_p4 = pnand %p1358_p7, %p1352_p3 }
 0x1f5   : > { %1362 = shalt.err (!%p1359_p4)
}
 0x1f6   : > { %1211 = dma.vmem_to_hbm [thread:$0]  (%p2437_p0), %s2341_s30, 128, %s2339_s27, %s993_s28  }
 0x1f7 PF: > { %s1021_s29 = sand.u32 1, %s1401_s9   ;;  %p2438_p10 = scmp.ne.s32.totalorder %s2407_s24, 0 }
 0x1f8   : > { %p2439_p12 = scmp.ge.s32.totalorder %s1421_s14, 2  ;;  %s1022_s16 = scalar_lea.sflag [#allocation4], %s1021_s29 }
 0x1fa   : > { %p1221_p1 = pnand %p2439_p12, %p2438_p10 }
 0x1fc   : > { %1396 = dma.done.wait (!%p1221_p1), %s1022_s16, 128  }
 0x1fd   : > { %1398 = vsyncadd (!%p1221_p1), %s1022_s16, 4294967168  ;;  %s21_s14 = sadd.s32 1, %s1421_s14   ;;  %s2440_s9 = smov %s1405_s10 }
 0x1fe   : > { %p18_p2 = scmp.ge.s32.totalorder %s21_s14, 4   ;;  %s2441_s10 = smov %s1409_s11 }
 0x1ff   : > { %s2442_s11 = smov %s1497_s23  ;;  %s2443_s12 = smov %s1417_s13 }
 0x200   : > { %s2444_s13 = smov %s2446_s17  ;;  %20 = sbr.rel (!%p18_p2) target bundleno = 8 (0x8), region = 87 }
 0x207   :  { %1027 = vsyncpa [#allocation3], 1 }
 0x208   :  { %1029 = vsyncpa [#allocation3 + $0x1], 1 }
 0x209   :  { %1030 = vsyncpa [#allocation6], 1 }
 0x20a   :  { %1032 = vsyncpa [#allocation6 + $0x1], 1 }
 0x20b   :  { %1033 = vsyncpa [#allocation4], 1 }
 0x20c   :  { %1035 = vsyncpa [#allocation4 + $0x1], 1 }

</bundles_post_ra>
